<compile_context>
chip_gen: v5e
topology: v5e:2x2
jax: 0.10.0
libtpu: 0.0.40
codegen_flags: <defaults>
</compile_context>

<pallas_src>
import jax
import jax.numpy as jnp
from jax.experimental import pallas as pl
from jax.experimental.pallas import tpu as pltpu

HIDDEN_SIZE = 32
DROPOUT_P = 0.3

# Logical dims and their lane-aligned padded versions.
D_IN, D_IN_PAD = 784, 896
D_H1, D_H1_PAD = 400, 512
D_H2, D_H2_PAD = 100, 128
D_OUT_PAD = 128            # holds [mu (H) | logvar (H) | zero pad]


def encoder_kernel(x_ref,        # (TB, 896)  bf16
                   drop_ref,     # (TB, 512)  f32   keep/(1-p) or 0
                   w1_ref,       # (896, 512) bf16
                   b1_ref,       # (1, 512)   f32
                   w2_ref,       # (512, 128) bf16
                   b2_ref,       # (1, 128)   f32
                   wh_ref,       # (128, 128) bf16  fused [wmu | wvar | 0]
                   bh_ref,       # (1, 128)   f32   fused [bmu | bvar | 0]
                   out_ref):     # (TB, 128)  f32   [mu | logvar | 0]
    # fc1 (bf16 operands, f32 MXU accumulation) -> dropout scale -> tanh
    h1 = jnp.dot(x_ref[...], w1_ref[...],
                 preferred_element_type=jnp.float32) + b1_ref[...]
    h1 = jnp.tanh(h1 * drop_ref[...])

    # fc2 -> tanh
    h2 = jnp.dot(h1.astype(jnp.bfloat16), w2_ref[...],
                 preferred_element_type=jnp.float32) + b2_ref[...]
    h2 = jnp.tanh(h2)

    # fused mu/logvar heads -> single lane-dense (TB, 128) store
    out_ref[...] = jnp.dot(h2.astype(jnp.bfloat16), wh_ref[...],
                           preferred_element_type=jnp.float32) + bh_ref[...]


def init_params(key, hidden_size=HIDDEN_SIZE):
    """Deterministic synthetic parameters (nn.Linear init, weights transposed
    to (in_features, out_features) so the kernel computes y = x @ W + b)."""
    ks = jax.random.split(key, 8)

    def linear(kw, kb, fan_in, fan_out):
        bound = 1.0 / jnp.sqrt(fan_in)
        w = jax.random.uniform(kw, (fan_in, fan_out), jnp.float32, -bound, bound)
        b = jax.random.uniform(kb, (1, fan_out), jnp.float32, -bound, bound)
        return w, b

    w1, b1 = linear(ks[0], ks[1], D_IN, D_H1)
    w2, b2 = linear(ks[2], ks[3], D_H1, D_H2)
    wmu, bmu = linear(ks[4], ks[5], D_H2, hidden_size)
    wvar, bvar = linear(ks[6], ks[7], D_H2, hidden_size)
    return dict(w1=w1, b1=b1, w2=w2, b2=b2,
                wmu=wmu, bmu=bmu, wvar=wvar, bvar=bvar)


def _round_up(n, m):
    return ((n + m - 1) // m) * m


def _pad2(a, rows, cols):
    return jnp.pad(a, ((0, rows - a.shape[0]), (0, cols - a.shape[1])))


def encoder_forward(x, params, dropout_key, hidden_size=HIDDEN_SIZE):
    assert 2 * hidden_size <= D_OUT_PAD
    # Flatten like torch's x.view(-1, 784)
    x2 = x.reshape(-1, D_IN).astype(jnp.float32)
    B = x2.shape[0]

    # Batch tile: 256 rows for large batches (MXU-friendly, fits default
    # scoped VMEM on v5e/v6e/v7x with resident bf16 weights), padded-to-8
    # single tile for tiny batches.
    TB = min(256, _round_up(max(B, 8), 8))
    B_pad = _round_up(B, TB)
    grid = (B_pad // TB,)

    # Lane-aligned, bf16 operands (biases stay f32 and add post-accumulation).
    x_p = _pad2(x2, B_pad, D_IN_PAD).astype(jnp.bfloat16)
    w1 = _pad2(params["w1"], D_IN_PAD, D_H1_PAD).astype(jnp.bfloat16)
    b1 = _pad2(params["b1"], 1, D_H1_PAD)
    w2 = _pad2(params["w2"], D_H1_PAD, D_H2_PAD).astype(jnp.bfloat16)
    b2 = _pad2(params["b2"], 1, D_H2_PAD)
    wh = _pad2(jnp.concatenate([params["wmu"], params["wvar"]], axis=1),
               D_H2_PAD, D_OUT_PAD).astype(jnp.bfloat16)
    bh = _pad2(jnp.concatenate([params["bmu"], params["bvar"]], axis=1),
               1, D_OUT_PAD)

    # Dropout keep/scale tensor: kept entries = 1/(1-p), dropped = 0.
    # F.dropout's default is training=True, so dropout is active in forward.
    keep = jax.random.bernoulli(dropout_key, 1.0 - DROPOUT_P, (B_pad, D_H1_PAD))
    dropscale = keep.astype(jnp.float32) * (1.0 / (1.0 - DROPOUT_P))

    out = pl.pallas_call(
        encoder_kernel,
        out_shape=jax.ShapeDtypeStruct((B_pad, D_OUT_PAD), jnp.float32),
        grid=grid,
        in_specs=[
            pl.BlockSpec((TB, D_IN_PAD), lambda i: (i, 0)),        # x tile
            pl.BlockSpec((TB, D_H1_PAD), lambda i: (i, 0)),        # dropout tile
            pl.BlockSpec((D_IN_PAD, D_H1_PAD), lambda i: (0, 0)),  # w1 (resident)
            pl.BlockSpec((1, D_H1_PAD), lambda i: (0, 0)),         # b1
            pl.BlockSpec((D_H1_PAD, D_H2_PAD), lambda i: (0, 0)),  # w2
            pl.BlockSpec((1, D_H2_PAD), lambda i: (0, 0)),         # b2
            pl.BlockSpec((D_H2_PAD, D_OUT_PAD), lambda i: (0, 0)), # fused head W
            pl.BlockSpec((1, D_OUT_PAD), lambda i: (0, 0)),        # fused head b
        ],
        out_specs=pl.BlockSpec((TB, D_OUT_PAD), lambda i: (i, 0)),
        compiler_params=pltpu.CompilerParams(
            dimension_semantics=("parallel",)),
    )(x_p, dropscale, w1, b1, w2, b2, wh, bh)

    mu = out[:B, :hidden_size]
    logvar = out[:B, hidden_size:2 * hidden_size]
    return mu, logvar


if __name__ == "__main__":
    key = jax.random.PRNGKey(0)
    k_params, k_x, k_drop = jax.random.split(key, 3)

    params = init_params(k_params, HIDDEN_SIZE)

    # Small MNIST-like input: (batch=2, channels=1, 28, 28) -> view(-1, 784)
    x = jax.random.normal(k_x, (2, 1, 28, 28), dtype=jnp.float32)

    mu, logvar = encoder_forward(x, params, k_drop, HIDDEN_SIZE)
    jax.block_until_ready((mu, logvar))

    assert mu.shape == (2, HIDDEN_SIZE) and logvar.shape == (2, HIDDEN_SIZE)
    assert bool(jnp.all(jnp.isfinite(mu))) and bool(jnp.all(jnp.isfinite(logvar)))
    print("KERNEL_OK")
</pallas_src>

<mosaic_0001>
module attributes {stable_mosaic.version = 11 : i64} {
  func.func @encoder_kernel(%arg0: i32, %arg1: memref<8x896xbf16, #tpu.memory_space<vmem>>, %arg2: memref<8x512xf32, #tpu.memory_space<vmem>>, %arg3: memref<896x512xbf16, #tpu.memory_space<vmem>>, %arg4: memref<1x512xf32, #tpu.memory_space<vmem>>, %arg5: memref<512x128xbf16, #tpu.memory_space<vmem>>, %arg6: memref<1x128xf32, #tpu.memory_space<vmem>>, %arg7: memref<128x128xbf16, #tpu.memory_space<vmem>>, %arg8: memref<1x128xf32, #tpu.memory_space<vmem>>, %arg9: memref<8x128xf32, #tpu.memory_space<vmem>>) attributes {dimension_semantics = [#tpu.dimension_semantics<parallel>], iteration_bounds = array<i64: 1>, scalar_prefetch = 0 : i64, scratch_operands = 0 : i64, tpu.core_type = #tpu.core_type<tc>, window_params = [{transform_indices = @transform_0, window_bounds = array<i64: 8, 896>}, {transform_indices = @transform_1, window_bounds = array<i64: 8, 512>}, {pipeline_mode = #tpu.pipeline_mode<synchronous>, transform_indices = @transform_2, window_bounds = array<i64: 896, 512>}, {pipeline_mode = #tpu.pipeline_mode<synchronous>, transform_indices = @transform_3, window_bounds = array<i64: 1, 512>}, {pipeline_mode = #tpu.pipeline_mode<synchronous>, transform_indices = @transform_4, window_bounds = array<i64: 512, 128>}, {pipeline_mode = #tpu.pipeline_mode<synchronous>, transform_indices = @transform_5, window_bounds = array<i64: 1, 128>}, {pipeline_mode = #tpu.pipeline_mode<synchronous>, transform_indices = @transform_6, window_bounds = array<i64: 128, 128>}, {pipeline_mode = #tpu.pipeline_mode<synchronous>, transform_indices = @transform_7, window_bounds = array<i64: 1, 128>}, {transform_indices = @transform_8, window_bounds = array<i64: 8, 128>}]} {
    %c0 = arith.constant 0 : index
    %c0_0 = arith.constant 0 : index
    %0 = vector.load %arg1[%c0, %c0_0] : memref<8x896xbf16, #tpu.memory_space<vmem>>, vector<8x896xbf16>
    %c0_1 = arith.constant 0 : index
    %c0_2 = arith.constant 0 : index
    %1 = vector.load %arg3[%c0_1, %c0_2] : memref<896x512xbf16, #tpu.memory_space<vmem>>, vector<896x512xbf16>
    %cst = arith.constant dense<0.000000e+00> : vector<8x512xf32>
    %2 = tpu.matmul %0, %1, %cst {dimension_numbers = #tpu.dot_dimension_numbers<[1], [0], [0], [1], [0, 0, 1, 1], [], []>} : vector<8x896xbf16>, vector<896x512xbf16>, vector<8x512xf32> -> vector<8x512xf32>
    %c0_3 = arith.constant 0 : index
    %c0_4 = arith.constant 0 : index
    %3 = vector.load %arg4[%c0_3, %c0_4] : memref<1x512xf32, #tpu.memory_space<vmem>>, vector<1x512xf32>
    %4 = vector.broadcast %3 : vector<1x512xf32> to vector<8x512xf32>
    %5 = arith.addf %2, %4 : vector<8x512xf32>
    %c0_5 = arith.constant 0 : index
    %c0_6 = arith.constant 0 : index
    %6 = vector.load %arg2[%c0_5, %c0_6] : memref<8x512xf32, #tpu.memory_space<vmem>>, vector<8x512xf32>
    %7 = arith.mulf %5, %6 : vector<8x512xf32>
    %8 = math.tanh %7 : vector<8x512xf32>
    %9 = arith.truncf %8 : vector<8x512xf32> to vector<8x512xbf16>
    %c0_7 = arith.constant 0 : index
    %c0_8 = arith.constant 0 : index
    %10 = vector.load %arg5[%c0_7, %c0_8] : memref<512x128xbf16, #tpu.memory_space<vmem>>, vector<512x128xbf16>
    %cst_9 = arith.constant dense<0.000000e+00> : vector<8x128xf32>
    %11 = tpu.matmul %9, %10, %cst_9 {dimension_numbers = #tpu.dot_dimension_numbers<[1], [0], [0], [1], [0, 0, 1, 1], [], []>} : vector<8x512xbf16>, vector<512x128xbf16>, vector<8x128xf32> -> vector<8x128xf32>
    %c0_10 = arith.constant 0 : index
    %c0_11 = arith.constant 0 : index
    %12 = vector.load %arg6[%c0_10, %c0_11] : memref<1x128xf32, #tpu.memory_space<vmem>>, vector<1x128xf32>
    %13 = vector.broadcast %12 : vector<1x128xf32> to vector<8x128xf32>
    %14 = arith.addf %11, %13 : vector<8x128xf32>
    %15 = math.tanh %14 : vector<8x128xf32>
    %16 = arith.truncf %15 : vector<8x128xf32> to vector<8x128xbf16>
    %c0_12 = arith.constant 0 : index
    %c0_13 = arith.constant 0 : index
    %17 = vector.load %arg7[%c0_12, %c0_13] : memref<128x128xbf16, #tpu.memory_space<vmem>>, vector<128x128xbf16>
    %cst_14 = arith.constant dense<0.000000e+00> : vector<8x128xf32>
    %18 = tpu.matmul %16, %17, %cst_14 {dimension_numbers = #tpu.dot_dimension_numbers<[1], [0], [0], [1], [0, 0, 1, 1], [], []>} : vector<8x128xbf16>, vector<128x128xbf16>, vector<8x128xf32> -> vector<8x128xf32>
    %c0_15 = arith.constant 0 : index
    %c0_16 = arith.constant 0 : index
    %19 = vector.load %arg8[%c0_15, %c0_16] : memref<1x128xf32, #tpu.memory_space<vmem>>, vector<1x128xf32>
    %20 = vector.broadcast %19 : vector<1x128xf32> to vector<8x128xf32>
    %21 = arith.addf %18, %20 : vector<8x128xf32>
    %c0_17 = arith.constant 0 : index
    %c0_18 = arith.constant 0 : index
    %22 = vector.load %arg9[%c0_17, %c0_18] : memref<8x128xf32, #tpu.memory_space<vmem>>, vector<8x128xf32>
    tpu.vector_store %arg9[%c0_17, %c0_18], %21 {strides = array<i32>} : memref<8x128xf32, #tpu.memory_space<vmem>>, vector<8x128xf32>,
    return
  }
  func.func @transform_0(%arg0: i32) -> (i32, i32) {
    %c0_i32 = arith.constant 0 : i32
    %c0_i32_0 = arith.constant 0 : i32
    return %arg0, %c0_i32 : i32, i32
  }
  func.func @transform_1(%arg0: i32) -> (i32, i32) {
    %c0_i32 = arith.constant 0 : i32
    %c0_i32_0 = arith.constant 0 : i32
    return %arg0, %c0_i32 : i32, i32
  }
  func.func @transform_2(%arg0: i32) -> (i32, i32) {
    %c0_i32 = arith.constant 0 : i32
    %c0_i32_0 = arith.constant 0 : i32
    %c0_i32_1 = arith.constant 0 : i32
    return %c0_i32, %c0_i32_0 : i32, i32
  }
  func.func @transform_3(%arg0: i32) -> (i32, i32) {
    %c0_i32 = arith.constant 0 : i32
    %c0_i32_0 = arith.constant 0 : i32
    %c0_i32_1 = arith.constant 0 : i32
    return %c0_i32, %c0_i32_0 : i32, i32
  }
  func.func @transform_4(%arg0: i32) -> (i32, i32) {
    %c0_i32 = arith.constant 0 : i32
    %c0_i32_0 = arith.constant 0 : i32
    %c0_i32_1 = arith.constant 0 : i32
    return %c0_i32, %c0_i32_0 : i32, i32
  }
  func.func @transform_5(%arg0: i32) -> (i32, i32) {
    %c0_i32 = arith.constant 0 : i32
    %c0_i32_0 = arith.constant 0 : i32
    %c0_i32_1 = arith.constant 0 : i32
    return %c0_i32, %c0_i32_0 : i32, i32
  }
  func.func @transform_6(%arg0: i32) -> (i32, i32) {
    %c0_i32 = arith.constant 0 : i32
    %c0_i32_0 = arith.constant 0 : i32
    %c0_i32_1 = arith.constant 0 : i32
    return %c0_i32, %c0_i32_0 : i32, i32
  }
  func.func @transform_7(%arg0: i32) -> (i32, i32) {
    %c0_i32 = arith.constant 0 : i32
    %c0_i32_0 = arith.constant 0 : i32
    %c0_i32_1 = arith.constant 0 : i32
    return %c0_i32, %c0_i32_0 : i32, i32
  }
  func.func @transform_8(%arg0: i32) -> (i32, i32) {
    %c0_i32 = arith.constant 0 : i32
    %c0_i32_0 = arith.constant 0 : i32
    return %arg0, %c0_i32 : i32, i32
  }
}

</mosaic_0001>

<bundles_post_ra>
// kernel: tpu_custom_call.1
= control target key start
LH: loop header
LB: loop body
LE: loop exit
PB: predicated region body
PF: predicated region fallthrough
CT: control target
= control target key end

     0   :  { %13 = vsyncpa [#allocation3], 0  ;;  %s3973_s0 = inlined_call_operand.hbm [shape: bf16[8,896], index: 0, kind: input, shape index: {}]   ;;  %s3974_s1 = inlined_call_operand.hbm [shape: f32[8,512], index: 1, kind: input, shape index: {}]   ;;  %s3975_s2 = inlined_call_operand.hbm [shape: bf16[896,512], index: 2, kind: input, shape index: {}]   ;;  %s3976_s3 = inlined_call_operand.hbm [shape: f32[1,512], index: 3, kind: input, shape index: {}]   ;;  %s3977_s4 = inlined_call_operand.hbm [shape: bf16[512,128], index: 4, kind: input, shape index: {}]   ;;  %s3978_s5 = inlined_call_operand.vmem [shape: f32[1,128], index: 5, kind: input, shape index: {}]   ;;  %s3979_s6 = inlined_call_operand.hbm [shape: bf16[128,128], index: 6, kind: input, shape index: {}]   ;;  %s3980_s7 = inlined_call_operand.vmem [shape: f32[1,128], index: 7, kind: input, shape index: {}]   ;;  %s3981_s8 = inlined_call_operand.hbm [shape: f32[8,128], index: 8, kind: output, shape index: {}]  }
   0x1   :  { %14 = vsyncpa [#allocation6], 0 }
   0x2   :  { %15 = vsyncpa [#allocation9], 0 }
   0x3   :  { %16 = vsyncpa [#allocation12], 0  ;;  %s34_s29 = sshll.u32 %s3974_s1, 4  ;;  %s35_s29 = int_to_ptr.hbm [resolvable:$true] %s34_s29 }
   0x4   :  { %17 = vsyncpa [#allocation4], 0  ;;  %s3818_s30 = smov [#allocation5]   ;;  %s58_s12 = sshll.u32 %s3976_s3, 4  ;;  %s59_s12 = int_to_ptr.hbm [resolvable:$true] %s58_s12 }
   0x5   :  { %s36_s9 = sshll.u32 %s3818_s30, 4  ;;  %s3819_s13 = smov [#allocation8]   ;;  %s37_s9 = int_to_ptr.vmem [resolvable:$true] %s36_s9 }
   0x6   :  { %39 = dma.hbm_to_vmem [thread:$0]  %s35_s29, 512, %s37_s9, [#allocation6]  }
   0x7   :  { %s60_s14 = sshll.u32 %s3819_s13, 4  ;;  %s23_s17 = sshll.u32 %s3973_s0, 4  ;;  %s61_s14 = int_to_ptr.vmem [resolvable:$true] %s60_s14  ;;  %s24_s17 = int_to_ptr.hbm [resolvable:$true] %s23_s17 }
   0x8   :  { %63 = dma.hbm_to_vmem [thread:$0]  %s59_s12, 64, %s61_s14, [#allocation9]  }
   0x9   :  { %s44_s19 = sshll.u32 %s3975_s2, 4  ;;  %s3820_s20 = smov [#allocation2]   ;;  %s45_s19 = int_to_ptr.hbm [resolvable:$true] %s44_s19 }
   0xa   :  { %s25_s21 = sshll.u32 %s3820_s20, 4  ;;  %s3821_s3 = smov [#allocation7]   ;;  %s26_s21 = int_to_ptr.vmem [resolvable:$true] %s25_s21 }
   0xb   :  { %28 = dma.hbm_to_vmem [thread:$0]  %s24_s17, 448, %s26_s21, [#allocation3]  }
   0xc   :  { %s46_s22 = sshll.u32 %s3821_s3, 4  ;;  %s3822_s23 = smov 256   ;;  %s47_s22 = int_to_ptr.vmem [resolvable:$true] %s46_s22 }
   0xd   :  { %s3823_s24 = smov 16   ;;  %s68_s26 = sshll.u32 %s3977_s4, 4  ;;  %s69_s26 = int_to_ptr.hbm [resolvable:$true] %s68_s26 }
   0xe   :  { %52 = dma.hbm_to_vmem [thread:$0]  %s45_s19, 28672, %s47_s22, [#allocation6], %s3822_s23, %s3822_s23, %s3823_s24  }
   0xf   :  { %s3824_s27 = smov [#allocation10]   ;;  %s83_s30 = sshll.u32 %s3979_s6, 4  ;;  %s84_s30 = int_to_ptr.hbm [resolvable:$true] %s83_s30 }
  0x10   :  { %s70_s28 = sshll.u32 %s3824_s27, 4  ;;  %s3825_s9 = smov 64   ;;  %s71_s28 = int_to_ptr.vmem [resolvable:$true] %s70_s28 }
  0x11   :  { %s3826_s10 = smov 4   ;;  %s3827_s11 = smov [#allocation11]  }
  0x12   :  { %76 = dma.hbm_to_vmem [thread:$0]  %s69_s26, 4096, %s71_s28, [#allocation9], %s3825_s9, %s3825_s9, %s3826_s10  }
  0x13   :  { %s85_s12 = sshll.u32 %s3827_s11, 4  ;;  %s86_s12 = int_to_ptr.vmem [resolvable:$true] %s85_s12 }
  0x14   :  { %91 = dma.hbm_to_vmem [thread:$0]  %s84_s30, 1024, %s86_s12, [#allocation12], %s3825_s9, %s3825_s9, %s3826_s10  }
  0x15   :  { %3808 = dma.done.wait [#allocation3], 448  }
  0x16   :  { %3809 = vsyncadd [#allocation3], 4294966848 }
  0x17   :  { %3810 = dma.done.wait [#allocation6], 29184  }
  0x18   :  { %3811 = vsyncadd [#allocation6], 4294938112 }
  0x19   :  { %3812 = dma.done.wait [#allocation9], 4160  }
  0x1a   :  { %3813 = vsyncadd [#allocation9], 4294963136 }
  0x1b   :  { %3814 = dma.done.wait [#allocation12], 1024  }
  0x1c   :  { %3815 = vsyncadd [#allocation12], 4294966272  ;;  %v2411_v0 = vld [vmem:[#allocation7 + $0xe0] sm:$0xf]  ;;  %v3383_v1 = vld [vmem:[#allocation7 + $0xec] sm:$0xf0] }
  0x1d   :  { %v2539_v2 = vld [vmem:[#allocation7 + $0x1e0] sm:$0xf]  ;;  %v2412_v3 = vor.u32 %v3383_v1, %v2411_v0  ;;  %v3415_v4 = vld [vmem:[#allocation7 + $0x1ec] sm:$0xf0]  ;;  %s3828_s14 = smov [#allocation13]   ;;  %s2284_s1 = sshll.u32 %s3981_s8, 4  ;;  %s2285_s1 = int_to_ptr.hbm [resolvable:$true] %s2284_s1 }
  0x1e   :  { %v2667_v5 = vld [vmem:[#allocation7 + $0x2e0] sm:$0xf]  ;;  %v3447_v6 = vld [vmem:[#allocation7 + $0x2ec] sm:$0xf0]  ;;  %v2540_v7 = vor.u32 %v3415_v4, %v2539_v2  ;;  %s2282_s15 = sshll.u32 %s3828_s14, 4  ;;  %s2283_s15 = int_to_ptr.vmem [resolvable:$true] %s2282_s15 }
  0x1f   :  { %v2668_v8 = vor.u32 %v3447_v6, %v2667_v5  ;;  %v2795_v9 = vld [vmem:[#allocation7 + $0x3e0] sm:$0xf]  ;;  %v3479_v10 = vld [vmem:[#allocation7 + $0x3ec] sm:$0xf0]  ;;  %1501 = vmatpush.bf16.msra.mxu0 %v2412_v3 }
  0x20   :  { %v2395_v11 = vld [vmem:[#allocation7 + $0xc0] sm:$0xf]  ;;  %v2796_v12 = vor.u32 %v3479_v10, %v2795_v9  ;;  %v3379_v13 = vld [vmem:[#allocation7 + $0xcc] sm:$0xf0]  ;;  %1514 = vmatpush.bf16.msra.mxu1 %v2540_v7 }
  0x21   :  { %v2523_v14 = vld [vmem:[#allocation7 + $0x1c0] sm:$0xf]  ;;  %v3411_v15 = vld [vmem:[#allocation7 + $0x1cc] sm:$0xf0]  ;;  %1527 = vmatpush.bf16.msra.mxu2 %v2668_v8  ;;  %v2396_v16 = vor.u32 %v3379_v13, %v2395_v11 }
  0x22   :  { %v2524_v17 = vor.u32 %v3411_v15, %v2523_v14  ;;  %v2651_v18 = vld [vmem:[#allocation7 + $0x2c0] sm:$0xf]  ;;  %v3443_v19 = vld [vmem:[#allocation7 + $0x2cc] sm:$0xf0]  ;;  %1540 = vmatpush.bf16.msra.mxu3 %v2796_v12 }
  0x23   :  { %v2779_v20 = vld [vmem:[#allocation7 + $0x3c0] sm:$0xf]  ;;  %v2652_v21 = vor.u32 %v3443_v19, %v2651_v18  ;;  %v3475_v22 = vld [vmem:[#allocation7 + $0x3cc] sm:$0xf0]  ;;  %1502 = vmatpush.bf16.msra.mxu0 %v2396_v16 }
  0x24   :  { %v2379_v23 = vld [vmem:[#allocation7 + $0xa0] sm:$0xf]  ;;  %v3375_v24 = vld [vmem:[#allocation7 + $0xac] sm:$0xf0]  ;;  %v2780_v25 = vor.u32 %v3475_v22, %v2779_v20  ;;  %1515 = vmatpush.bf16.msra.mxu1 %v2524_v17 }
  0x25   :  { %v2507_v26 = vld [vmem:[#allocation7 + $0x1a0] sm:$0xf]  ;;  %v3407_v27 = vld [vmem:[#allocation7 + $0x1ac] sm:$0xf0]  ;;  %v2380_v29 = vor.u32 %v3375_v24, %v2379_v23  ;;  %1528 = vmatpush.bf16.msra.mxu2 %v2652_v21 }
  0x26   :  { %v2635_v28 = vld [vmem:[#allocation7 + $0x2a0] sm:$0xf]  ;;  %v3439_v30 = vld [vmem:[#allocation7 + $0x2ac] sm:$0xf0]  ;;  %v2508_v33 = vor.u32 %v3407_v27, %v2507_v26  ;;  %1541 = vmatpush.bf16.msra.mxu3 %v2780_v25 }
  0x27   :  { %v2763_v31 = vld [vmem:[#allocation7 + $0x3a0] sm:$0xf]  ;;  %v3471_v32 = vld [vmem:[#allocation7 + $0x3ac] sm:$0xf0]  ;;  %v2636_v34 = vor.u32 %v3439_v30, %v2635_v28  ;;  %1503 = vmatpush.bf16.msra.mxu0 %v2380_v29 }
  0x28   :  { %v2363_v35 = vld [vmem:[#allocation7 + $0x80] sm:$0xf]  ;;  %v3371_v36 = vld [vmem:[#allocation7 + $0x8c] sm:$0xf0]  ;;  %v2764_v38 = vor.u32 %v3471_v32, %v2763_v31  ;;  %1516 = vmatpush.bf16.msra.mxu1 %v2508_v33 }
  0x29   :  { %v2491_v37 = vld [vmem:[#allocation7 + $0x180] sm:$0xf]  ;;  %v3403_v39 = vld [vmem:[#allocation7 + $0x18c] sm:$0xf0]  ;;  %v2364_v44 = vor.u32 %v3371_v36, %v2363_v35  ;;  %1529 = vmatpush.bf16.msra.mxu2 %v2636_v34 }
  0x2a   :  { %v2619_v40 = vld [vmem:[#allocation7 + $0x280] sm:$0xf]  ;;  %v3435_v41 = vld [vmem:[#allocation7 + $0x28c] sm:$0xf0]  ;;  %v2492_v45 = vor.u32 %v3403_v39, %v2491_v37  ;;  %1542 = vmatpush.bf16.msra.mxu3 %v2764_v38  ;;  %v3381_v37 = vld [vmem:[#allocation7 + $0xe4] sm:$0xf] }
  0x2b   :  { %v2747_v42 = vld [vmem:[#allocation7 + $0x380] sm:$0xf]  ;;  %v3467_v43 = vld [vmem:[#allocation7 + $0x38c] sm:$0xf0]  ;;  %v2620_v46 = vor.u32 %v3435_v41, %v2619_v40  ;;  %1504 = vmatpush.bf16.msra.mxu0 %v2364_v44  ;;  %v2413_v38 = vld [vmem:[#allocation7 + $0xf0] sm:$0xf0] }
  0x2c   :  { %v2347_v47 = vld [vmem:[#allocation7 + $0x60] sm:$0xf]  ;;  %v3367_v48 = vld [vmem:[#allocation7 + $0x6c] sm:$0xf0]  ;;  %v2748_v50 = vor.u32 %v3467_v43, %v2747_v42  ;;  %1517 = vmatpush.bf16.msra.mxu1 %v2492_v45 }
  0x2d   :  { %v2475_v49 = vld [vmem:[#allocation7 + $0x160] sm:$0xf]  ;;  %v3399_v51 = vld [vmem:[#allocation7 + $0x16c] sm:$0xf0]  ;;  %v2348_v56 = vor.u32 %v3367_v48, %v2347_v47  ;;  %1530 = vmatpush.bf16.msra.mxu2 %v2620_v46  ;;  %v2416_v46 = vor.u32 %v3381_v37, %v2413_v38 }
  0x2e   :  { %v2603_v52 = vld [vmem:[#allocation7 + $0x260] sm:$0xf]  ;;  %v3431_v53 = vld [vmem:[#allocation7 + $0x26c] sm:$0xf0]  ;;  %v2476_v57 = vor.u32 %v3399_v51, %v2475_v49  ;;  %1543 = vmatpush.bf16.msra.mxu3 %v2748_v50  ;;  %v3377_v50 = vld [vmem:[#allocation7 + $0xc4] sm:$0xf] }
  0x2f   :  { %v2731_v54 = vld [vmem:[#allocation7 + $0x360] sm:$0xf]  ;;  %v3463_v55 = vld [vmem:[#allocation7 + $0x36c] sm:$0xf0]  ;;  %v2604_v58 = vor.u32 %v3431_v53, %v2603_v52  ;;  %1505 = vmatpush.bf16.msra.mxu0 %v2348_v56  ;;  %v2397_v51 = vld [vmem:[#allocation7 + $0xd0] sm:$0xf0] }
  0x30   :  { %v2331_v59 = vld [vmem:[#allocation7 + $0x40] sm:$0xf]  ;;  %v3363_v60 = vld [vmem:[#allocation7 + $0x4c] sm:$0xf0]  ;;  %v2732_v62 = vor.u32 %v3463_v55, %v2731_v54  ;;  %1518 = vmatpush.bf16.msra.mxu1 %v2476_v57 }
  0x31   :  { %v2459_v61 = vld [vmem:[#allocation7 + $0x140] sm:$0xf]  ;;  %v3395_v63 = vld [vmem:[#allocation7 + $0x14c] sm:$0xf0]  ;;  %v2332_v4 = vor.u32 %v3363_v60, %v2331_v59  ;;  %1531 = vmatpush.bf16.msra.mxu2 %v2604_v58  ;;  %v2400_v59 = vor.u32 %v3377_v50, %v2397_v51 }
  0x32   :  { %v2587_v0 = vld [vmem:[#allocation7 + $0x240] sm:$0xf]  ;;  %v3427_v1 = vld [vmem:[#allocation7 + $0x24c] sm:$0xf0]  ;;  %v2460_v5 = vor.u32 %v3395_v63, %v2459_v61  ;;  %1544 = vmatpush.bf16.msra.mxu3 %v2732_v62  ;;  %v3373_v62 = vld [vmem:[#allocation7 + $0xa4] sm:$0xf] }
  0x33   :  { %v2715_v2 = vld [vmem:[#allocation7 + $0x340] sm:$0xf]  ;;  %v3459_v3 = vld [vmem:[#allocation7 + $0x34c] sm:$0xf0]  ;;  %v2588_v6 = vor.u32 %v3427_v1, %v2587_v0  ;;  %1506 = vmatpush.bf16.msra.mxu0 %v2332_v4  ;;  %v2381_v63 = vld [vmem:[#allocation7 + $0xb0] sm:$0xf0] }
  0x34   :  { %v2315_v7 = vld [vmem:[#allocation7 + $0x20] sm:$0xf]  ;;  %v3359_v8 = vld [vmem:[#allocation7 + $0x2c] sm:$0xf0]  ;;  %v2716_v10 = vor.u32 %v3459_v3, %v2715_v2  ;;  %1519 = vmatpush.bf16.msra.mxu1 %v2460_v5  ;;  %v118_v3 = vld [vmem:[#allocation2] sm:$0xff] }
  0x35   :  { %v2443_v9 = vld [vmem:[#allocation7 + $0x120] sm:$0xf]  ;;  %v3391_v11 = vld [vmem:[#allocation7 + $0x12c] sm:$0xf0]  ;;  %v2316_v16 = vor.u32 %v3359_v8, %v2315_v7  ;;  %1532 = vmatpush.bf16.msra.mxu2 %v2588_v6 }
  0x36   :  { %v2571_v12 = vld [vmem:[#allocation7 + $0x220] sm:$0xf]  ;;  %v3423_v13 = vld [vmem:[#allocation7 + $0x22c] sm:$0xf0]  ;;  %v2444_v19 = vor.u32 %v3391_v11, %v2443_v9  ;;  %1545 = vmatpush.bf16.msra.mxu3 %v2716_v10  ;;  %v360_v9 = vunpack.c.l.b16 %v118_v3  ;;  %v2384_v11 = vor.u32 %v3373_v62, %v2381_v63 }
  0x37   :  { %v2699_v14 = vld [vmem:[#allocation7 + $0x320] sm:$0xf]  ;;  %v3455_v15 = vld [vmem:[#allocation7 + $0x32c] sm:$0xf0]  ;;  %v2572_v20 = vor.u32 %v3423_v13, %v2571_v12  ;;  %1507 = vmatpush.bf16.msra.mxu0 %v2316_v16  ;;  %v3369_v16 = vld [vmem:[#allocation7 + $0x84] sm:$0xf] }
  0x38   :  { %v2299_v17 = vld [vmem:[#allocation7] sm:$0xf]  ;;  %v3355_v18 = vld [vmem:[#allocation7 + $0xc] sm:$0xf0]  ;;  %v2700_v24 = vor.u32 %v3455_v15, %v2699_v14  ;;  %1520 = vmatpush.bf16.msra.mxu1 %v2444_v19  ;;  %v361_v15 = vunpack.c.h.b16 %v118_v3  ;;  %v3894_v19 = vpack.c.b16 %v360_v9, %v360_v9  ;;  %v121_v3 = vld [vmem:[#allocation2 + $0x18] sm:$0xf] }
  0x39   :  { %v2427_v21 = vld [vmem:[#allocation7 + $0x100] sm:$0xf]  ;;  %v3387_v22 = vld [vmem:[#allocation7 + $0x10c] sm:$0xf0]  ;;  %v2300_v31 = vor.u32 %v3355_v18, %v2299_v17  ;;  %1533 = vmatpush.bf16.msra.mxu2 %v2572_v20  ;;  %v2365_v17 = vld [vmem:[#allocation7 + $0x90] sm:$0xf0] }
  0x3a   :  { %v2555_v23 = vld [vmem:[#allocation7 + $0x200] sm:$0xf]  ;;  %v3419_v25 = vld [vmem:[#allocation7 + $0x20c] sm:$0xf0]  ;;  %v2428_v35 = vor.u32 %v3387_v22, %v2427_v21  ;;  %1546 = vmatpush.bf16.msra.mxu3 %v2700_v24  ;;  %v3898_v22 = vpack.c.b16 %v361_v15, %v361_v15  ;;  %v2541_v9 = vld [vmem:[#allocation7 + $0x1f0] sm:$0xf0]  ;;  %v366_v15 = vunpack.c.l.b16 %v121_v3 }
  0x3b   :  { %v2683_v26 = vld [vmem:[#allocation7 + $0x300] sm:$0xf]  ;;  %v3451_v27 = vld [vmem:[#allocation7 + $0x30c] sm:$0xf0]  ;;  %v2556_v36 = vor.u32 %v3419_v25, %v2555_v23  ;;  %1508 = vmatpush.bf16.msra.mxu0 %v2300_v31 }
  0x3c   :  { %v2923_v28 = vld [vmem:[#allocation7 + $0x4e0] sm:$0xf]  ;;  %v3511_v29 = vld [vmem:[#allocation7 + $0x4ec] sm:$0xf0]  ;;  %v2684_v39 = vor.u32 %v3451_v27, %v2683_v26  ;;  %1521 = vmatpush.bf16.msra.mxu1 %v2428_v35 }
  0x3d   :  { %v3051_v30 = vld [vmem:[#allocation7 + $0x5e0] sm:$0xf]  ;;  %v3543_v32 = vld [vmem:[#allocation7 + $0x5ec] sm:$0xf0]  ;;  %v2924_v40 = vor.u32 %v3511_v29, %v2923_v28  ;;  %1534 = vmatpush.bf16.msra.mxu2 %v2556_v36  ;;  %v2368_v28 = vor.u32 %v3369_v16, %v2365_v17 }
  0x3e   :  { %v3179_v33 = vld [vmem:[#allocation7 + $0x6e0] sm:$0xf]  ;;  %v3575_v34 = vld [vmem:[#allocation7 + $0x6ec] sm:$0xf0]  ;;  %v3052_v41 = vor.u32 %v3543_v32, %v3051_v30  ;;  %1547 = vmatpush.bf16.msra.mxu3 %v2684_v39  ;;  %v3365_v32 = vld [vmem:[#allocation7 + $0x64] sm:$0xf]  ;;  %1509 = vmatmul.bf16.vlgmr.msra.gmra.mxu0 %v3894_v19 }
  0x3f   :  { %v3180_v42 = vor.u32 %v3575_v34, %v3179_v33  ;;  %v2907_v43 = vld [vmem:[#allocation7 + $0x4c0] sm:$0xf]  ;;  %v3507_v44 = vld [vmem:[#allocation7 + $0x4cc] sm:$0xf0]  ;;  %1553 = vmatpush.bf16.msrb.mxu0 %v2924_v40  ;;  %v2349_v33 = vld [vmem:[#allocation7 + $0x70] sm:$0xf0]  ;;  %1522 = vmatmul.bf16.vlgmr.msra.gmra.mxu1 %v3898_v22 }
  0x40   :  { %v3035_v45 = vld [vmem:[#allocation7 + $0x5c0] sm:$0xf]  ;;  %v3539_v47 = vld [vmem:[#allocation7 + $0x5cc] sm:$0xf0]  ;;  %v2908_v52 = vor.u32 %v3507_v44, %v2907_v43  ;;  %1566 = vmatpush.bf16.msrb.mxu1 %v3052_v41  ;;  %v2352_v40 = vor.u32 %v3365_v32, %v2349_v33  ;;  %v3361_v44 = vld [vmem:[#allocation7 + $0x44] sm:$0xf] }
  0x41   :  { %v3163_v48 = vld [vmem:[#allocation7 + $0x6c0] sm:$0xf]  ;;  %v3571_v49 = vld [vmem:[#allocation7 + $0x6cc] sm:$0xf0]  ;;  %1579 = vmatpush.bf16.msrb.mxu2 %v3180_v42  ;;  %v3036_v54 = vor.u32 %v3539_v47, %v3035_v45  ;;  %v2333_v45 = vld [vmem:[#allocation7 + $0x50] sm:$0xf0] }
  0x42   :  { %v2891_v53 = vld [vmem:[#allocation7 + $0x4a0] sm:$0xf]  ;;  %v3164_v55 = vor.u32 %v3571_v49, %v3163_v48  ;;  %v3503_v56 = vld [vmem:[#allocation7 + $0x4ac] sm:$0xf0]  ;;  %1592 = vmatpush.bf16.msrb.mxu3 %v2416_v46  ;;  %v3441_v32 = vld [vmem:[#allocation7 + $0x2c4] sm:$0xf] }
  0x43   :  { %v3019_v57 = vld [vmem:[#allocation7 + $0x5a0] sm:$0xf]  ;;  %v3535_v58 = vld [vmem:[#allocation7 + $0x5ac] sm:$0xf0]  ;;  %1554 = vmatpush.bf16.msrb.mxu0 %v2908_v52  ;;  %v2892_v0 = vor.u32 %v3503_v56, %v2891_v53  ;;  %v2336_v52 = vor.u32 %v3361_v44, %v2333_v45  ;;  %v3357_v56 = vld [vmem:[#allocation7 + $0x24] sm:$0xf] }
  0x44   :  { %v3147_v60 = vld [vmem:[#allocation7 + $0x6a0] sm:$0xf]  ;;  %v3567_v61 = vld [vmem:[#allocation7 + $0x6ac] sm:$0xf0]  ;;  %v3020_v1 = vor.u32 %v3535_v58, %v3019_v57  ;;  %1567 = vmatpush.bf16.msrb.mxu1 %v3036_v54  ;;  %v2317_v57 = vld [vmem:[#allocation7 + $0x30] sm:$0xf0] }
  0x45   :  { %v119_v2 = vld [vmem:[#allocation2 + $0x8] sm:$0xff]  ;;  %1580 = vmatpush.bf16.msrb.mxu2 %v3164_v55  ;;  %v3148_v4 = vor.u32 %v3567_v61, %v3147_v60  ;;  %v2875_v5 = vld [vmem:[#allocation7 + $0x480] sm:$0xf]  ;;  %v3405_v45 = vld [vmem:[#allocation7 + $0x1a4] sm:$0xf] }
  0x46   :  { %v3499_v6 = vld [vmem:[#allocation7 + $0x48c] sm:$0xf0]  ;;  %v3003_v7 = vld [vmem:[#allocation7 + $0x580] sm:$0xf]  ;;  %v362_v8 = vunpack.c.l.b16 %v119_v2  ;;  %v363_v10 = vunpack.c.h.b16 %v119_v2  ;;  %1593 = vmatpush.bf16.msrb.mxu3 %v2400_v59 }
  0x47   :  { %v3531_v12 = vld [vmem:[#allocation7 + $0x58c] sm:$0xf0]  ;;  %v3131_v13 = vld [vmem:[#allocation7 + $0x680] sm:$0xf]  ;;  %1555 = vmatpush.bf16.msrb.mxu0 %v2892_v0  ;;  %v2876_v21 = vor.u32 %v3499_v6, %v2875_v5  ;;  %v3353_v5 = vld [vmem:[#allocation7 + $0x4] sm:$0xf] }
  0x48   :  { %v3563_v14 = vld [vmem:[#allocation7 + $0x68c] sm:$0xf0]  ;;  %v3892_v18 = vpack.c.b16 %v362_v8, %v362_v8  ;;  %v3896_v20 = vpack.c.b16 %v363_v10, %v363_v10  ;;  %1568 = vmatpush.bf16.msrb.mxu1 %v3020_v1  ;;  %v3004_v23 = vor.u32 %v3531_v12, %v3003_v7  ;;  %v2859_v25 = vld [vmem:[#allocation7 + $0x460] sm:$0xf]  ;;  %v2301_v6 = vld [vmem:[#allocation7 + $0x10] sm:$0xf0] }
  0x49   :  { %1581 = vmatpush.bf16.msrb.mxu2 %v3148_v4  ;;  %v3132_v24 = vor.u32 %v3563_v14, %v3131_v13  ;;  %v3495_v26 = vld [vmem:[#allocation7 + $0x46c] sm:$0xf0]  ;;  %v2987_v27 = vld [vmem:[#allocation7 + $0x560] sm:$0xf]  ;;  %v2320_v4 = vor.u32 %v3357_v56, %v2317_v57  ;;  %v120_v7 = vld [vmem:[#allocation2 + $0x10] sm:$0xff] }
  0x4a   :  { %1594 = vmatpush.bf16.msrb.mxu3 %v2384_v11  ;;  %v3527_v29 = vld [vmem:[#allocation7 + $0x56c] sm:$0xf0]  ;;  %v3115_v30 = vld [vmem:[#allocation7 + $0x660] sm:$0xf]  ;;  %1535 = vmatmul.bf16.vlgmr.msra.gmra.mxu2 %v3892_v18  ;;  %v2860_v34 = vor.u32 %v3495_v26, %v2859_v25  ;;  %v3413_v8 = vld [vmem:[#allocation7 + $0x1e4] sm:$0xf]  ;;  %v365_v25 = vunpack.c.h.b16 %v120_v7  ;;  %v2304_v26 = vor.u32 %v3353_v5, %v2301_v6 }
  0x4b   :  { %v3559_v31 = vld [vmem:[#allocation7 + $0x66c] sm:$0xf0]  ;;  %1548 = vmatmul.bf16.vlgmr.msra.gmra.mxu3 %v3896_v20  ;;  %1556 = vmatpush.bf16.msrb.mxu0 %v2876_v21  ;;  %v2988_v35 = vor.u32 %v3527_v29, %v2987_v27  ;;  %v2843_v37 = vld [vmem:[#allocation7 + $0x440] sm:$0xf]  ;;  %v3445_v10 = vld [vmem:[#allocation7 + $0x2e4] sm:$0xf]  ;;  %v2544_v27 = vor.u32 %v3413_v8, %v2541_v9 }
  0x4c   :  { %1569 = vmatpush.bf16.msrb.mxu1 %v3004_v23  ;;  %v3116_v36 = vor.u32 %v3559_v31, %v3115_v30  ;;  %v3491_v38 = vld [vmem:[#allocation7 + $0x44c] sm:$0xf0]  ;;  %v2971_v39 = vld [vmem:[#allocation7 + $0x540] sm:$0xf]  ;;  %v2669_v12 = vld [vmem:[#allocation7 + $0x2f0] sm:$0xf0] }
  0x4d   :  { %1582 = vmatpush.bf16.msrb.mxu2 %v3132_v24  ;;  %v3523_v41 = vld [vmem:[#allocation7 + $0x54c] sm:$0xf0]  ;;  %v3099_v42 = vld [vmem:[#allocation7 + $0x640] sm:$0xf]  ;;  %v2844_v46 = vor.u32 %v3491_v38, %v2843_v37  ;;  %v3477_v13 = vld [vmem:[#allocation7 + $0x3e4] sm:$0xf]  ;;  %v364_v24 = vunpack.c.l.b16 %v120_v7  ;;  %v3904_v37 = vpack.c.b16 %v366_v15, %v366_v15 }
  0x4e   :  { %1595 = vmatpush.bf16.msrb.mxu3 %v2368_v28  ;;  %v3555_v43 = vld [vmem:[#allocation7 + $0x64c] sm:$0xf0]  ;;  %v2972_v47 = vor.u32 %v3523_v41, %v2971_v39  ;;  %v2827_v49 = vld [vmem:[#allocation7 + $0x420] sm:$0xf]  ;;  %v2797_v14 = vld [vmem:[#allocation7 + $0x3f0] sm:$0xf0]  ;;  %v2672_v28 = vor.u32 %v3445_v10, %v2669_v12  ;;  %v3908_v41 = vpack.c.b16 %v365_v25, %v365_v25 }
  0x4f   :  { %1557 = vmatpush.bf16.msrb.mxu0 %v2860_v34  ;;  %v3100_v48 = vor.u32 %v3555_v43, %v3099_v42  ;;  %v3487_v50 = vld [vmem:[#allocation7 + $0x42c] sm:$0xf0]  ;;  %v2955_v51 = vld [vmem:[#allocation7 + $0x520] sm:$0xf]  ;;  %v3509_v21 = vld [vmem:[#allocation7 + $0x4e4] sm:$0xf]  ;;  %v2800_v29 = vor.u32 %v3477_v13, %v2797_v14 }
  0x50   :  { %1570 = vmatpush.bf16.msrb.mxu1 %v2988_v35  ;;  %v3519_v53 = vld [vmem:[#allocation7 + $0x52c] sm:$0xf0]  ;;  %v3083_v54 = vld [vmem:[#allocation7 + $0x620] sm:$0xf]  ;;  %v2828_v59 = vor.u32 %v3487_v50, %v2827_v49  ;;  %v2925_v23 = vld [vmem:[#allocation7 + $0x4f0] sm:$0xf0] }
  0x51   :  { %1583 = vmatpush.bf16.msrb.mxu2 %v3116_v36  ;;  %v3551_v55 = vld [vmem:[#allocation7 + $0x62c] sm:$0xf0]  ;;  %v2811_v58 = vld [vmem:[#allocation7 + $0x400] sm:$0xf]  ;;  %v2956_v63 = vor.u32 %v3519_v53, %v2955_v51  ;;  %v3409_v30 = vld [vmem:[#allocation7 + $0x1c4] sm:$0xf]  ;;  %v2928_v33 = vor.u32 %v3509_v21, %v2925_v23 }
  0x52   :  { %1596 = vmatpush.bf16.msrb.mxu3 %v2352_v40  ;;  %v3483_v60 = vld [vmem:[#allocation7 + $0x40c] sm:$0xf0]  ;;  %v2939_v61 = vld [vmem:[#allocation7 + $0x500] sm:$0xf]  ;;  %v3084_v0 = vor.u32 %v3551_v55, %v3083_v54  ;;  %v2525_v31 = vld [vmem:[#allocation7 + $0x1d0] sm:$0xf0]  ;;  %v3906_v40 = vpack.c.b16 %v364_v24, %v364_v24 }
  0x53   :  { %1558 = vmatpush.bf16.msrb.mxu0 %v2844_v46  ;;  %v3515_v62 = vld [vmem:[#allocation7 + $0x50c] sm:$0xf0]  ;;  %v3067_v1 = vld [vmem:[#allocation7 + $0x600] sm:$0xf]  ;;  %v2812_v11 = vor.u32 %v3483_v60, %v2811_v58  ;;  %v2653_v34 = vld [vmem:[#allocation7 + $0x2d0] sm:$0xf0]  ;;  %v2528_v42 = vor.u32 %v3409_v30, %v2525_v31 }
  0x54   :  { %1571 = vmatpush.bf16.msrb.mxu1 %v2972_v47  ;;  %v3547_v2 = vld [vmem:[#allocation7 + $0x60c] sm:$0xf0]  ;;  %v2940_v16 = vor.u32 %v3515_v62, %v2939_v61  ;;  %v3473_v35 = vld [vmem:[#allocation7 + $0x3c4] sm:$0xf]  ;;  %v2781_v36 = vld [vmem:[#allocation7 + $0x3d0] sm:$0xf0]  ;;  %v2656_v43 = vor.u32 %v3441_v32, %v2653_v34 }
  0x55   :  { %1584 = vmatpush.bf16.msrb.mxu2 %v3100_v48  ;;  %v3068_v17 = vor.u32 %v3547_v2, %v3067_v1  ;;  %v3505_v38 = vld [vmem:[#allocation7 + $0x4c4] sm:$0xf]  ;;  %v2909_v39 = vld [vmem:[#allocation7 + $0x4d0] sm:$0xf0]  ;;  %v2784_v44 = vor.u32 %v3473_v35, %v2781_v36 }
  0x56   :  { %1597 = vmatpush.bf16.msrb.mxu3 %v2336_v52  ;;  %v2509_v46 = vld [vmem:[#allocation7 + $0x1b0] sm:$0xf0]  ;;  %v3437_v47 = vld [vmem:[#allocation7 + $0x2a4] sm:$0xf]  ;;  %v2912_v48 = vor.u32 %v3505_v38, %v2909_v39 }
  0x57   :  { %1559 = vmatpush.bf16.msrb.mxu0 %v2828_v59  ;;  %v2637_v49 = vld [vmem:[#allocation7 + $0x2b0] sm:$0xf0]  ;;  %v3469_v50 = vld [vmem:[#allocation7 + $0x3a4] sm:$0xf]  ;;  %v2512_v54 = vor.u32 %v3405_v45, %v2509_v46 }
  0x58   :  { %1572 = vmatpush.bf16.msrb.mxu1 %v2956_v63  ;;  %v2765_v51 = vld [vmem:[#allocation7 + $0x3b0] sm:$0xf0]  ;;  %v3501_v52 = vld [vmem:[#allocation7 + $0x4a4] sm:$0xf]  ;;  %v2640_v55 = vor.u32 %v3437_v47, %v2637_v49 }
  0x59   :  { %1585 = vmatpush.bf16.msrb.mxu2 %v3084_v0  ;;  %v2893_v53 = vld [vmem:[#allocation7 + $0x4b0] sm:$0xf0]  ;;  %v2768_v56 = vor.u32 %v3469_v50, %v2765_v51  ;;  %v3401_v57 = vld [vmem:[#allocation7 + $0x184] sm:$0xf] }
  0x5a   :  { %1598 = vmatpush.bf16.msrb.mxu3 %v2320_v4  ;;  %v2493_v58 = vld [vmem:[#allocation7 + $0x190] sm:$0xf0]  ;;  %v3433_v59 = vld [vmem:[#allocation7 + $0x284] sm:$0xf]  ;;  %v2896_v60 = vor.u32 %v3501_v52, %v2893_v53 }
  0x5b   :  { %1560 = vmatpush.bf16.msrb.mxu0 %v2812_v11  ;;  %v2621_v61 = vld [vmem:[#allocation7 + $0x290] sm:$0xf0]  ;;  %v3465_v62 = vld [vmem:[#allocation7 + $0x384] sm:$0xf]  ;;  %v2496_v2 = vor.u32 %v3401_v57, %v2493_v58 }
  0x5c   :  { %1573 = vmatpush.bf16.msrb.mxu1 %v2940_v16  ;;  %v2749_v63 = vld [vmem:[#allocation7 + $0x390] sm:$0xf0]  ;;  %v3497_v0 = vld [vmem:[#allocation7 + $0x484] sm:$0xf]  ;;  %v2624_v3 = vor.u32 %v3433_v59, %v2621_v61 }
  0x5d   :  { %1586 = vmatpush.bf16.msrb.mxu2 %v3068_v17  ;;  %v2877_v1 = vld [vmem:[#allocation7 + $0x490] sm:$0xf0]  ;;  %v2752_v4 = vor.u32 %v3465_v62, %v2749_v63  ;;  %v3397_v5 = vld [vmem:[#allocation7 + $0x164] sm:$0xf]  ;;  %v2419_v62 = vld [vmem:[#allocation7 + $0xe8] sm:$0xf] }
  0x5e   :  { %1599 = vmatpush.bf16.msrb.mxu3 %v2304_v26  ;;  %1561 = vmatmul.bf16.vlgmr.msrb.gmra.mxu0 %v3906_v40  ;;  %v2477_v6 = vld [vmem:[#allocation7 + $0x170] sm:$0xf0]  ;;  %v3429_v7 = vld [vmem:[#allocation7 + $0x264] sm:$0xf]  ;;  %v2880_v8 = vor.u32 %v3497_v0, %v2877_v1  ;;  %v3384_v63 = vld [vmem:[#allocation7 + $0xf4] sm:$0xf0] }
  0x5f   :  { %1605 = vmatpush.bf16.msra.mxu0 %v2544_v27  ;;  %1574 = vmatmul.bf16.vlgmr.msrb.gmra.mxu1 %v3908_v41  ;;  %v2605_v9 = vld [vmem:[#allocation7 + $0x270] sm:$0xf0]  ;;  %v3461_v10 = vld [vmem:[#allocation7 + $0x364] sm:$0xf]  ;;  %v2480_v14 = vor.u32 %v3397_v5, %v2477_v6 }
  0x60   :  { %1618 = vmatpush.bf16.msra.mxu1 %v2672_v28  ;;  %1587 = vmatmul.bf16.vlgmr.msrb.gmra.mxu2 %v3904_v37  ;;  %v2733_v11 = vld [vmem:[#allocation7 + $0x370] sm:$0xf0]  ;;  %v3493_v12 = vld [vmem:[#allocation7 + $0x464] sm:$0xf]  ;;  %v2608_v15 = vor.u32 %v3429_v7, %v2605_v9  ;;  %v2420_v7 = vor.u32 %v3384_v63, %v2419_v62 }
  0x61   :  { %1631 = vmatpush.bf16.msra.mxu2 %v2800_v29  ;;  %1600 = vmatmul.bf16.vlgmr.msrb.gmra.mxu3 %v3894_v19  ;;  %v2861_v13 = vld [vmem:[#allocation7 + $0x470] sm:$0xf0]  ;;  %v2736_v16 = vor.u32 %v3461_v10, %v2733_v11  ;;  %v3393_v17 = vld [vmem:[#allocation7 + $0x144] sm:$0xf] }
  0x62   :  { %1644 = vmatpush.bf16.msra.mxu3 %v2928_v33  ;;  %v2461_v21 = vld [vmem:[#allocation7 + $0x150] sm:$0xf0]  ;;  %v3425_v23 = vld [vmem:[#allocation7 + $0x244] sm:$0xf]  ;;  %v2864_v24 = vor.u32 %v3493_v12, %v2861_v13  ;;  %v2403_v13 = vld [vmem:[#allocation7 + $0xc8] sm:$0xf] }
  0x63   :  { %1606 = vmatpush.bf16.msra.mxu0 %v2528_v42  ;;  %v2589_v25 = vld [vmem:[#allocation7 + $0x250] sm:$0xf0]  ;;  %v3457_v26 = vld [vmem:[#allocation7 + $0x344] sm:$0xf]  ;;  %v2464_v30 = vor.u32 %v3393_v17, %v2461_v21 }
  0x64   :  { %1619 = vmatpush.bf16.msra.mxu1 %v2656_v43  ;;  %v2717_v27 = vld [vmem:[#allocation7 + $0x350] sm:$0xf0]  ;;  %v3489_v28 = vld [vmem:[#allocation7 + $0x444] sm:$0xf]  ;;  %v2592_v31 = vor.u32 %v3425_v23, %v2589_v25 }
  0x65   :  { %1632 = vmatpush.bf16.msra.mxu2 %v2784_v44  ;;  %v2845_v29 = vld [vmem:[#allocation7 + $0x450] sm:$0xf0]  ;;  %v2720_v32 = vor.u32 %v3457_v26, %v2717_v27  ;;  %v3389_v33 = vld [vmem:[#allocation7 + $0x124] sm:$0xf] }
  0x66   :  { %1645 = vmatpush.bf16.msra.mxu3 %v2912_v48  ;;  %v2445_v34 = vld [vmem:[#allocation7 + $0x130] sm:$0xf0]  ;;  %v3421_v35 = vld [vmem:[#allocation7 + $0x224] sm:$0xf]  ;;  %v2848_v36 = vor.u32 %v3489_v28, %v2845_v29  ;;  %v2387_v29 = vld [vmem:[#allocation7 + $0xa8] sm:$0xf] }
  0x67   :  { %1607 = vmatpush.bf16.msra.mxu0 %v2512_v54  ;;  %v2573_v38 = vld [vmem:[#allocation7 + $0x230] sm:$0xf0]  ;;  %v3453_v39 = vld [vmem:[#allocation7 + $0x324] sm:$0xf]  ;;  %v2448_v45 = vor.u32 %v3389_v33, %v2445_v34 }
  0x68   :  { %1620 = vmatpush.bf16.msra.mxu1 %v2640_v55  ;;  %v2701_v42 = vld [vmem:[#allocation7 + $0x330] sm:$0xf0]  ;;  %v3485_v43 = vld [vmem:[#allocation7 + $0x424] sm:$0xf]  ;;  %v2576_v48 = vor.u32 %v3421_v35, %v2573_v38 }
  0x69   :  { %1633 = vmatpush.bf16.msra.mxu2 %v2768_v56  ;;  %v2829_v44 = vld [vmem:[#allocation7 + $0x430] sm:$0xf0]  ;;  %v3385_v46 = vld [vmem:[#allocation7 + $0x104] sm:$0xf]  ;;  %v2704_v49 = vor.u32 %v3453_v39, %v2701_v42 }
  0x6a   :  { %1646 = vmatpush.bf16.msra.mxu3 %v2896_v60  ;;  %v2429_v47 = vld [vmem:[#allocation7 + $0x110] sm:$0xf0]  ;;  %v3417_v50 = vld [vmem:[#allocation7 + $0x204] sm:$0xf]  ;;  %v2832_v53 = vor.u32 %v3485_v43, %v2829_v44  ;;  %v2371_v44 = vld [vmem:[#allocation7 + $0x88] sm:$0xf] }
  0x6b   :  { %1608 = vmatpush.bf16.msra.mxu0 %v2496_v2  ;;  %v2557_v51 = vld [vmem:[#allocation7 + $0x210] sm:$0xf0]  ;;  %v3449_v52 = vld [vmem:[#allocation7 + $0x304] sm:$0xf]  ;;  %v2432_v60 = vor.u32 %v3385_v46, %v2429_v47  ;;  %v2547_v2 = vld [vmem:[#allocation7 + $0x1e8] sm:$0xf] }
  0x6c   :  { %1621 = vmatpush.bf16.msra.mxu1 %v2624_v3  ;;  %v2685_v54 = vld [vmem:[#allocation7 + $0x310] sm:$0xf0]  ;;  %v3481_v55 = vld [vmem:[#allocation7 + $0x404] sm:$0xf]  ;;  %v2560_v0 = vor.u32 %v3417_v50, %v2557_v51  ;;  %v3416_v3 = vld [vmem:[#allocation7 + $0x1f4] sm:$0xf0] }
  0x6d   :  { %1634 = vmatpush.bf16.msra.mxu2 %v2752_v4  ;;  %v2813_v56 = vld [vmem:[#allocation7 + $0x410] sm:$0xf0]  ;;  %v3541_v57 = vld [vmem:[#allocation7 + $0x5e4] sm:$0xf]  ;;  %v2688_v1 = vor.u32 %v3449_v52, %v2685_v54  ;;  %v2548_v11 = vor.u32 %v3416_v3, %v2547_v2  ;;  %v2499_v46 = vld [vmem:[#allocation7 + $0x188] sm:$0xf] }
  0x6e   :  { %1647 = vmatpush.bf16.msra.mxu3 %v2880_v8  ;;  %v3053_v58 = vld [vmem:[#allocation7 + $0x5f0] sm:$0xf0]  ;;  %v3573_v59 = vld [vmem:[#allocation7 + $0x6e4] sm:$0xf]  ;;  %v2816_v4 = vor.u32 %v3481_v55, %v2813_v56  ;;  %v3404_v47 = vld [vmem:[#allocation7 + $0x194] sm:$0xf0] }
  0x6f   :  { %1609 = vmatpush.bf16.msra.mxu0 %v2480_v14  ;;  %v3181_v61 = vld [vmem:[#allocation7 + $0x6f0] sm:$0xf0]  ;;  %v3056_v5 = vor.u32 %v3541_v57, %v3053_v58  ;;  %v3537_v8 = vld [vmem:[#allocation7 + $0x5c4] sm:$0xf]  ;;  %v3380_v14 = vld [vmem:[#allocation7 + $0xd4] sm:$0xf0]  ;;  %v2500_v54 = vor.u32 %v3404_v47, %v2499_v46 }
  0x70   :  { %1622 = vmatpush.bf16.msra.mxu1 %v2608_v15  ;;  %v3184_v6 = vor.u32 %v3573_v59, %v3181_v61  ;;  %v3037_v9 = vld [vmem:[#allocation7 + $0x5d0] sm:$0xf0]  ;;  %v3569_v10 = vld [vmem:[#allocation7 + $0x6c4] sm:$0xf]  ;;  %v2531_v15 = vld [vmem:[#allocation7 + $0x1c8] sm:$0xf]  ;;  %v2404_v23 = vor.u32 %v3380_v14, %v2403_v13 }
  0x71   :  { %1635 = vmatpush.bf16.msra.mxu2 %v2736_v16  ;;  %v3165_v12 = vld [vmem:[#allocation7 + $0x6d0] sm:$0xf0]  ;;  %v3412_v16 = vld [vmem:[#allocation7 + $0x1d4] sm:$0xf0]  ;;  %v3040_v17 = vor.u32 %v3537_v8, %v3037_v9  ;;  %v3565_v26 = vld [vmem:[#allocation7 + $0x6a4] sm:$0xf] }
  0x72   :  { %1648 = vmatpush.bf16.msra.mxu3 %v2864_v24  ;;  %v3168_v21 = vor.u32 %v3569_v10, %v3165_v12  ;;  %v3533_v24 = vld [vmem:[#allocation7 + $0x5a4] sm:$0xf]  ;;  %v3021_v25 = vld [vmem:[#allocation7 + $0x5b0] sm:$0xf0]  ;;  %v2532_v27 = vor.u32 %v3412_v16, %v2531_v15  ;;  %v2355_v56 = vld [vmem:[#allocation7 + $0x68] sm:$0xf] }
  0x73   :  { %1610 = vmatpush.bf16.msra.mxu0 %v2464_v30  ;;  %v3149_v28 = vld [vmem:[#allocation7 + $0x6b0] sm:$0xf0]  ;;  %v3376_v30 = vld [vmem:[#allocation7 + $0xb4] sm:$0xf0]  ;;  %v3024_v33 = vor.u32 %v3533_v24, %v3021_v25  ;;  %v3561_v39 = vld [vmem:[#allocation7 + $0x684] sm:$0xf] }
  0x74   :  { %1623 = vmatpush.bf16.msra.mxu1 %v2592_v31  ;;  %v2515_v31 = vld [vmem:[#allocation7 + $0x1a8] sm:$0xf]  ;;  %v3152_v34 = vor.u32 %v3565_v26, %v3149_v28  ;;  %v2388_v35 = vor.u32 %v3376_v30, %v2387_v29  ;;  %v3005_v38 = vld [vmem:[#allocation7 + $0x590] sm:$0xf0]  ;;  %v3525_v51 = vld [vmem:[#allocation7 + $0x564] sm:$0xf] }
  0x75   :  { %1636 = vmatpush.bf16.msra.mxu2 %v2720_v32  ;;  %v3408_v32 = vld [vmem:[#allocation7 + $0x1b4] sm:$0xf0]  ;;  %v3133_v43 = vld [vmem:[#allocation7 + $0x690] sm:$0xf0]  ;;  %v2483_v58 = vld [vmem:[#allocation7 + $0x168] sm:$0xf] }
  0x76   :  { %1649 = vmatpush.bf16.msra.mxu3 %v2848_v36  ;;  %v3529_v36 = vld [vmem:[#allocation7 + $0x584] sm:$0xf]  ;;  %v2516_v42 = vor.u32 %v3408_v32, %v2515_v31  ;;  %v2989_v52 = vld [vmem:[#allocation7 + $0x570] sm:$0xf0]  ;;  %v3368_v57 = vld [vmem:[#allocation7 + $0x74] sm:$0xf0] }
  0x77   :  { %1611 = vmatpush.bf16.msra.mxu0 %v2448_v45  ;;  %v3372_v45 = vld [vmem:[#allocation7 + $0x94] sm:$0xf0]  ;;  %v3117_v55 = vld [vmem:[#allocation7 + $0x670] sm:$0xf0]  ;;  %v2356_v62 = vor.u32 %v3368_v57, %v2355_v56  ;;  %v3521_v63 = vld [vmem:[#allocation7 + $0x544] sm:$0xf] }
  0x78   :  { %1624 = vmatpush.bf16.msra.mxu1 %v2576_v48  ;;  %v3008_v48 = vor.u32 %v3529_v36, %v3005_v38  ;;  %v2372_v50 = vor.u32 %v3372_v45, %v2371_v44  ;;  %v3400_v59 = vld [vmem:[#allocation7 + $0x174] sm:$0xf0]  ;;  %v3101_v3 = vld [vmem:[#allocation7 + $0x650] sm:$0xf0]  ;;  %v3549_v13 = vld [vmem:[#allocation7 + $0x624] sm:$0xf] }
  0x79   :  { %1637 = vmatpush.bf16.msra.mxu2 %v2704_v49  ;;  %v3136_v49 = vor.u32 %v3561_v39, %v3133_v43  ;;  %v2484_v2 = vor.u32 %v3400_v59, %v2483_v58  ;;  %v2957_v12 = vld [vmem:[#allocation7 + $0x530] sm:$0xf0]  ;;  %v2323_v16 = vld [vmem:[#allocation7 + $0x28] sm:$0xf]  ;;  %v3513_v25 = vld [vmem:[#allocation7 + $0x504] sm:$0xf] }
  0x7a   :  { %1650 = vmatpush.bf16.msra.mxu3 %v2832_v53  ;;  %v3557_v53 = vld [vmem:[#allocation7 + $0x664] sm:$0xf]  ;;  %v3085_v15 = vld [vmem:[#allocation7 + $0x630] sm:$0xf0]  ;;  %v2307_v31 = vld [vmem:[#allocation7 + $0x8] sm:$0xf] }
  0x7b   :  { %1612 = vmatpush.bf16.msra.mxu0 %v2432_v60  ;;  %v2992_v60 = vor.u32 %v3525_v51, %v2989_v52  ;;  %v3120_v61 = vor.u32 %v3557_v53, %v3117_v55  ;;  %v2941_v26 = vld [vmem:[#allocation7 + $0x510] sm:$0xf0]  ;;  %v3545_v29 = vld [vmem:[#allocation7 + $0x604] sm:$0xf]  ;;  %v2675_v36 = vld [vmem:[#allocation7 + $0x2e8] sm:$0xf] }
  0x7c   :  { %1625 = vmatpush.bf16.msra.mxu1 %v2560_v0  ;;  %v2973_v0 = vld [vmem:[#allocation7 + $0x550] sm:$0xf0]  ;;  %v3448_v38 = vld [vmem:[#allocation7 + $0x2f4] sm:$0xf0]  ;;  %v2803_v39 = vld [vmem:[#allocation7 + $0x3e8] sm:$0xf] }
  0x7d   :  { %1638 = vmatpush.bf16.msra.mxu2 %v2688_v1  ;;  %v3553_v1 = vld [vmem:[#allocation7 + $0x644] sm:$0xf]  ;;  %v2976_v8 = vor.u32 %v3521_v63, %v2973_v0  ;;  %v3069_v30 = vld [vmem:[#allocation7 + $0x610] sm:$0xf0]  ;;  %v3480_v43 = vld [vmem:[#allocation7 + $0x3f4] sm:$0xf0]  ;;  %v2676_v51 = vor.u32 %v3448_v38, %v2675_v36 }
  0x7e   :  { %1651 = vmatpush.bf16.msra.mxu3 %v2816_v4  ;;  %1613 = vmatmul.bf16.vlgmr.msra.gmra.mxu0 %v3898_v22  ;;  %v2339_v4 = vld [vmem:[#allocation7 + $0x48] sm:$0xf]  ;;  %v3104_v9 = vor.u32 %v3553_v1, %v3101_v3  ;;  %v3512_v45 = vld [vmem:[#allocation7 + $0x4f4] sm:$0xf0]  ;;  %v3072_v46 = vor.u32 %v3545_v29, %v3069_v30  ;;  %v2804_v52 = vor.u32 %v3480_v43, %v2803_v39 }
  0x7f   :  { %1657 = vmatpush.bf16.msrb.mxu0 %v3056_v5  ;;  %1626 = vmatmul.bf16.vlgmr.msra.gmra.mxu1 %v3892_v18  ;;  %v3364_v5 = vld [vmem:[#allocation7 + $0x54] sm:$0xf0]  ;;  %v2931_v44 = vld [vmem:[#allocation7 + $0x4e8] sm:$0xf] }
  0x80   :  { %1670 = vmatpush.bf16.msrb.mxu1 %v3184_v6  ;;  %1639 = vmatmul.bf16.vlgmr.msra.gmra.mxu2 %v3896_v20  ;;  %v2467_v6 = vld [vmem:[#allocation7 + $0x148] sm:$0xf]  ;;  %v2340_v10 = vor.u32 %v3364_v5, %v2339_v4  ;;  %v2932_v53 = vor.u32 %v3512_v45, %v2931_v44  ;;  %v3444_v55 = vld [vmem:[#allocation7 + $0x2d4] sm:$0xf0] }
  0x81   :  { %1683 = vmatpush.bf16.msrb.mxu2 %v2420_v7  ;;  %1652 = vmatmul.bf16.vlgmr.msra.gmra.mxu3 %v3906_v40  ;;  %v3396_v7 = vld [vmem:[#allocation7 + $0x154] sm:$0xf0]  ;;  %v2787_v56 = vld [vmem:[#allocation7 + $0x3c8] sm:$0xf] }
  0x82   :  { %1696 = vmatpush.bf16.msrb.mxu3 %v2548_v11  ;;  %v3517_v11 = vld [vmem:[#allocation7 + $0x524] sm:$0xf]  ;;  %v2468_v14 = vor.u32 %v3396_v7, %v2467_v6  ;;  %v3476_v58 = vld [vmem:[#allocation7 + $0x3d4] sm:$0xf0]  ;;  %v2915_v59 = vld [vmem:[#allocation7 + $0x4c8] sm:$0xf] }
  0x83   :  { %1658 = vmatpush.bf16.msrb.mxu0 %v3040_v17  ;;  %v3360_v17 = vld [vmem:[#allocation7 + $0x34] sm:$0xf0]  ;;  %v2960_v24 = vor.u32 %v3517_v11, %v2957_v12  ;;  %v2788_v0 = vor.u32 %v3476_v58, %v2787_v56  ;;  %v2771_v4 = vld [vmem:[#allocation7 + $0x3a8] sm:$0xf] }
  0x84   :  { %1671 = vmatpush.bf16.msrb.mxu1 %v3168_v21  ;;  %v2451_v21 = vld [vmem:[#allocation7 + $0x128] sm:$0xf]  ;;  %v2324_v28 = vor.u32 %v3360_v17, %v2323_v16  ;;  %v3440_v3 = vld [vmem:[#allocation7 + $0x2b4] sm:$0xf0] }
  0x85   :  { %1684 = vmatpush.bf16.msrb.mxu2 %v2404_v23  ;;  %v3392_v23 = vld [vmem:[#allocation7 + $0x134] sm:$0xf0]  ;;  %v2899_v7 = vld [vmem:[#allocation7 + $0x4a8] sm:$0xf] }
  0x86   :  { %1697 = vmatpush.bf16.msrb.mxu3 %v2532_v27  ;;  %v3088_v27 = vor.u32 %v3549_v13, %v3085_v15  ;;  %v2452_v32 = vor.u32 %v3392_v23, %v2451_v21  ;;  %v3472_v6 = vld [vmem:[#allocation7 + $0x3b4] sm:$0xf0]  ;;  %v2755_v16 = vld [vmem:[#allocation7 + $0x388] sm:$0xf] }
  0x87   :  { %1659 = vmatpush.bf16.msrb.mxu0 %v3024_v33  ;;  %v3356_v33 = vld [vmem:[#allocation7 + $0x14] sm:$0xf0]  ;;  %v2772_v12 = vor.u32 %v3472_v6, %v2771_v4  ;;  %v2883_v23 = vld [vmem:[#allocation7 + $0x488] sm:$0xf] }
  0x88   :  { %1672 = vmatpush.bf16.msrb.mxu1 %v3152_v34  ;;  %v2435_v34 = vld [vmem:[#allocation7 + $0x108] sm:$0xf]  ;;  %v2308_v47 = vor.u32 %v3356_v33, %v2307_v31  ;;  %v3436_v15 = vld [vmem:[#allocation7 + $0x294] sm:$0xf0] }
  0x89   :  { %1685 = vmatpush.bf16.msrb.mxu2 %v2388_v35  ;;  %v3388_v35 = vld [vmem:[#allocation7 + $0x114] sm:$0xf0]  ;;  %v2611_v30 = vld [vmem:[#allocation7 + $0x268] sm:$0xf] }
  0x8a   :  { %1698 = vmatpush.bf16.msrb.mxu3 %v2516_v42  ;;  %v2944_v42 = vor.u32 %v3513_v25, %v2941_v26  ;;  %v3468_v21 = vld [vmem:[#allocation7 + $0x394] sm:$0xf0]  ;;  %v3011_v25 = vld [vmem:[#allocation7 + $0x588] sm:$0xf] }
  0x8b   :  { %1660 = vmatpush.bf16.msrb.mxu0 %v3008_v48  ;;  %v3059_v48 = vld [vmem:[#allocation7 + $0x5e8] sm:$0xf]  ;;  %v3532_v26 = vld [vmem:[#allocation7 + $0x594] sm:$0xf0] }
  0x8c   :  { %1673 = vmatpush.bf16.msrb.mxu1 %v3136_v49  ;;  %v3544_v49 = vld [vmem:[#allocation7 + $0x5f4] sm:$0xf0]  ;;  %v3012_v33 = vor.u32 %v3532_v26, %v3011_v25  ;;  %v2995_v38 = vld [vmem:[#allocation7 + $0x568] sm:$0xf] }
  0x8d   :  { %1686 = vmatpush.bf16.msrb.mxu2 %v2372_v50  ;;  %v2436_v50 = vor.u32 %v3388_v35, %v2435_v34  ;;  %v3060_v57 = vor.u32 %v3544_v49, %v3059_v48  ;;  %v3432_v31 = vld [vmem:[#allocation7 + $0x274] sm:$0xf0]  ;;  %v2867_v35 = vld [vmem:[#allocation7 + $0x468] sm:$0xf] }
  0x8e   :  { %1699 = vmatpush.bf16.msrb.mxu3 %v2500_v54  ;;  %v2659_v54 = vld [vmem:[#allocation7 + $0x2c8] sm:$0xf]  ;;  %v3464_v34 = vld [vmem:[#allocation7 + $0x374] sm:$0xf0] }
  0x8f   :  { %1661 = vmatpush.bf16.msrb.mxu0 %v2992_v60  ;;  %v3508_v60 = vld [vmem:[#allocation7 + $0x4d4] sm:$0xf0]  ;;  %v2660_v63 = vor.u32 %v3444_v55, %v2659_v54  ;;  %v2595_v45 = vld [vmem:[#allocation7 + $0x248] sm:$0xf] }
  0x90   :  { %1674 = vmatpush.bf16.msrb.mxu1 %v3120_v61  ;;  %v3043_v61 = vld [vmem:[#allocation7 + $0x5c8] sm:$0xf]  ;;  %v2916_v1 = vor.u32 %v3508_v60, %v2915_v59  ;;  %v3496_v36 = vld [vmem:[#allocation7 + $0x474] sm:$0xf0] }
  0x91   :  { %1687 = vmatpush.bf16.msrb.mxu2 %v2356_v62  ;;  %v3540_v62 = vld [vmem:[#allocation7 + $0x5d4] sm:$0xf0]  ;;  %v2868_v44 = vor.u32 %v3496_v36, %v2867_v35  ;;  %v2707_v59 = vld [vmem:[#allocation7 + $0x328] sm:$0xf]  ;;  %v3378_v35 = vld [vmem:[#allocation7 + $0xcc] sm:$0xf] }
  0x92   :  { %1700 = vmatpush.bf16.msrb.mxu3 %v2484_v2  ;;  %v2643_v2 = vld [vmem:[#allocation7 + $0x2a8] sm:$0xf]  ;;  %v3044_v5 = vor.u32 %v3540_v62, %v3043_v61  ;;  %v3528_v39 = vld [vmem:[#allocation7 + $0x574] sm:$0xf0] }
  0x93   :  { %1662 = vmatpush.bf16.msrb.mxu0 %v2976_v8  ;;  %v3504_v8 = vld [vmem:[#allocation7 + $0x4b4] sm:$0xf0]  ;;  %v2644_v11 = vor.u32 %v3440_v3, %v2643_v2  ;;  %v2996_v48 = vor.u32 %v3528_v39, %v2995_v38  ;;  %v2835_v62 = vld [vmem:[#allocation7 + $0x428] sm:$0xf]  ;;  %v2405_v38 = vld [vmem:[#allocation7 + $0xd8] sm:$0xf0] }
  0x94   :  { %1675 = vmatpush.bf16.msrb.mxu1 %v3104_v9  ;;  %v3027_v9 = vld [vmem:[#allocation7 + $0x5a8] sm:$0xf]  ;;  %v2900_v13 = vor.u32 %v3504_v8, %v2899_v7  ;;  %v3460_v49 = vld [vmem:[#allocation7 + $0x354] sm:$0xf0]  ;;  %v3410_v39 = vld [vmem:[#allocation7 + $0x1cc] sm:$0xf] }
  0x95   :  { %1688 = vmatpush.bf16.msrb.mxu2 %v2340_v10  ;;  %v3536_v10 = vld [vmem:[#allocation7 + $0x5b4] sm:$0xf0]  ;;  %v2563_v3 = vld [vmem:[#allocation7 + $0x208] sm:$0xf] }
  0x96   :  { %1701 = vmatpush.bf16.msrb.mxu3 %v2468_v14  ;;  %v2627_v14 = vld [vmem:[#allocation7 + $0x288] sm:$0xf]  ;;  %v3028_v17 = vor.u32 %v3536_v10, %v3027_v9  ;;  %v3424_v58 = vld [vmem:[#allocation7 + $0x234] sm:$0xf0] }
  0x97   :  { %1663 = vmatpush.bf16.msrb.mxu0 %v2960_v24  ;;  %v3500_v24 = vld [vmem:[#allocation7 + $0x494] sm:$0xf0]  ;;  %v2691_v7 = vld [vmem:[#allocation7 + $0x308] sm:$0xf] }
  0x98   :  { %1676 = vmatpush.bf16.msrb.mxu1 %v3088_v27  ;;  %v2628_v27 = vor.u32 %v3436_v15, %v2627_v14  ;;  %v2884_v29 = vor.u32 %v3500_v24, %v2883_v23  ;;  %v3456_v61 = vld [vmem:[#allocation7 + $0x334] sm:$0xf0]  ;;  %v2819_v9 = vld [vmem:[#allocation7 + $0x408] sm:$0xf]  ;;  %v3414_v23 = vld [vmem:[#allocation7 + $0x1ec] sm:$0xf] }
  0x99   :  { %1689 = vmatpush.bf16.msrb.mxu2 %v2324_v28  ;;  %v2756_v28 = vor.u32 %v3468_v21, %v2755_v16  ;;  %v3420_v4 = vld [vmem:[#allocation7 + $0x214] sm:$0xf0]  ;;  %v3187_v14 = vld [vmem:[#allocation7 + $0x6e8] sm:$0xf]  ;;  %v3382_v16 = vld [vmem:[#allocation7 + $0xec] sm:$0xf] }
  0x9a   :  { %1702 = vmatpush.bf16.msrb.mxu3 %v2452_v32  ;;  %v2739_v32 = vld [vmem:[#allocation7 + $0x368] sm:$0xf]  ;;  %v3452_v8 = vld [vmem:[#allocation7 + $0x314] sm:$0xf0]  ;;  %v2421_v21 = vld [vmem:[#allocation7 + $0xf8] sm:$0xf0] }
  0x9b   :  { %1664 = vmatpush.bf16.msrb.mxu0 %v2944_v42  ;;  %v2612_v42 = vor.u32 %v3432_v31, %v2611_v30  ;;  %v2740_v43 = vor.u32 %v3464_v34, %v2739_v32  ;;  %v3576_v15 = vld [vmem:[#allocation7 + $0x6f4] sm:$0xf0]  ;;  %v2549_v24 = vld [vmem:[#allocation7 + $0x1f8] sm:$0xf0]  ;;  %v2692_v25 = vor.u32 %v3452_v8, %v2691_v7  ;;  %v2424_v31 = vor.u32 %v3382_v16, %v2421_v21  ;;  %v3123_v8 = vld [vmem:[#allocation7 + $0x668] sm:$0xf] }
  0x9c   :  { %1677 = vmatpush.bf16.msrb.mxu1 %v3072_v46  ;;  %v3428_v46 = vld [vmem:[#allocation7 + $0x254] sm:$0xf0]  ;;  %v3188_v30 = vor.u32 %v3576_v15, %v3187_v14  ;;  %v2552_v32 = vor.u32 %v3414_v23, %v2549_v24  ;;  %v2485_v14 = vld [vmem:[#allocation7 + $0x178] sm:$0xf0]  ;;  %v3430_v15 = vld [vmem:[#allocation7 + $0x26c] sm:$0xf] }
  0x9d   :  { %1690 = vmatpush.bf16.msrb.mxu2 %v2308_v47  ;;  %v2723_v47 = vld [vmem:[#allocation7 + $0x348] sm:$0xf]  ;;  %v2596_v54 = vor.u32 %v3428_v46, %v2595_v45  ;;  %v3572_v34 = vld [vmem:[#allocation7 + $0x6d4] sm:$0xf0]  ;;  %v2408_v46 = vor.u32 %v3378_v35, %v2405_v38  ;;  %v2613_v16 = vld [vmem:[#allocation7 + $0x278] sm:$0xf0] }
  0x9e   :  { %1703 = vmatpush.bf16.msrb.mxu3 %v2436_v50  ;;  %1665 = vmatmul.bf16.vlgmr.msrb.gmra.mxu0 %v3908_v41  ;;  %v2851_v50 = vld [vmem:[#allocation7 + $0x448] sm:$0xf]  ;;  %v2724_v55 = vor.u32 %v3460_v49, %v2723_v47  ;;  %v3568_v49 = vld [vmem:[#allocation7 + $0x6b4] sm:$0xf0] }
  0x9f   :  { %1709 = vmatpush.bf16.msra.mxu0 %v2676_v51  ;;  %1678 = vmatmul.bf16.vlgmr.msrb.gmra.mxu1 %v3904_v37  ;;  %v3492_v51 = vld [vmem:[#allocation7 + $0x454] sm:$0xf0]  ;;  %v3107_v24 = vld [vmem:[#allocation7 + $0x648] sm:$0xf] }
  0xa0   :  { %1722 = vmatpush.bf16.msra.mxu1 %v2804_v52  ;;  %1691 = vmatmul.bf16.vlgmr.msrb.gmra.mxu2 %v3894_v19  ;;  %v2979_v52 = vld [vmem:[#allocation7 + $0x548] sm:$0xf]  ;;  %v2852_v56 = vor.u32 %v3492_v51, %v2851_v50  ;;  %v3374_v50 = vld [vmem:[#allocation7 + $0xac] sm:$0xf] }
  0xa1   :  { %1735 = vmatpush.bf16.msra.mxu2 %v2932_v53  ;;  %1704 = vmatmul.bf16.vlgmr.msrb.gmra.mxu3 %v3898_v22  ;;  %v3524_v53 = vld [vmem:[#allocation7 + $0x554] sm:$0xf0]  ;;  %v3091_v38 = vld [vmem:[#allocation7 + $0x628] sm:$0xf] }
  0xa2   :  { %1748 = vmatpush.bf16.msra.mxu3 %v3060_v57  ;;  %v2579_v57 = vld [vmem:[#allocation7 + $0x228] sm:$0xf]  ;;  %v2980_v60 = vor.u32 %v3524_v53, %v2979_v52  ;;  %v2389_v52 = vld [vmem:[#allocation7 + $0xb8] sm:$0xf0]  ;;  %v3406_v53 = vld [vmem:[#allocation7 + $0x1ac] sm:$0xf] }
  0xa3   :  { %1710 = vmatpush.bf16.msra.mxu0 %v2660_v63  ;;  %v3488_v63 = vld [vmem:[#allocation7 + $0x434] sm:$0xf0]  ;;  %v2580_v2 = vor.u32 %v3424_v58, %v2579_v57  ;;  %v2392_v58 = vor.u32 %v3374_v50, %v2389_v52 }
  0xa4   :  { %1723 = vmatpush.bf16.msra.mxu1 %v2788_v0  ;;  %v2963_v0 = vld [vmem:[#allocation7 + $0x528] sm:$0xf]  ;;  %v2836_v6 = vor.u32 %v3488_v63, %v2835_v62  ;;  %v3370_v62 = vld [vmem:[#allocation7 + $0x8c] sm:$0xf]  ;;  %v3548_v52 = vld [vmem:[#allocation7 + $0x614] sm:$0xf0] }
  0xa5   :  { %1736 = vmatpush.bf16.msra.mxu2 %v2916_v1  ;;  %v3520_v1 = vld [vmem:[#allocation7 + $0x534] sm:$0xf0] }
  0xa6   :  { %1749 = vmatpush.bf16.msra.mxu3 %v3044_v5  ;;  %v2708_v5 = vor.u32 %v3456_v61, %v2707_v59  ;;  %v2964_v10 = vor.u32 %v3520_v1, %v2963_v0  ;;  %v3564_v61 = vld [vmem:[#allocation7 + $0x694] sm:$0xf0]  ;;  %v2373_v0 = vld [vmem:[#allocation7 + $0x98] sm:$0xf0]  ;;  %v3402_v1 = vld [vmem:[#allocation7 + $0x18c] sm:$0xf] }
  0xa7   :  { %1711 = vmatpush.bf16.msra.mxu0 %v2644_v11  ;;  %v3484_v11 = vld [vmem:[#allocation7 + $0x414] sm:$0xf0] }
  0xa8   :  { %1724 = vmatpush.bf16.msra.mxu1 %v2772_v12  ;;  %v2947_v12 = vld [vmem:[#allocation7 + $0x508] sm:$0xf]  ;;  %v2820_v26 = vor.u32 %v3484_v11, %v2819_v9  ;;  %v3560_v9 = vld [vmem:[#allocation7 + $0x674] sm:$0xf0] }
  0xa9   :  { %1737 = vmatpush.bf16.msra.mxu2 %v2900_v13  ;;  %v3516_v13 = vld [vmem:[#allocation7 + $0x514] sm:$0xf0] }
  0xaa   :  { %1750 = vmatpush.bf16.msra.mxu3 %v3028_v17  ;;  %v2564_v17 = vor.u32 %v3420_v4, %v2563_v3  ;;  %v3434_v3 = vld [vmem:[#allocation7 + $0x28c] sm:$0xf]  ;;  %v2629_v4 = vld [vmem:[#allocation7 + $0x298] sm:$0xf0] }
  0xab   :  { %1712 = vmatpush.bf16.msra.mxu0 %v2628_v27  ;;  %v3446_v27 = vld [vmem:[#allocation7 + $0x2ec] sm:$0xf]  ;;  %v2632_v11 = vor.u32 %v3434_v3, %v2629_v4  ;;  %v2933_v4 = vld [vmem:[#allocation7 + $0x4f8] sm:$0xf0] }
  0xac   :  { %1725 = vmatpush.bf16.msra.mxu1 %v2756_v28  ;;  %v2677_v28 = vld [vmem:[#allocation7 + $0x2f8] sm:$0xf0] }
  0xad   :  { %1738 = vmatpush.bf16.msra.mxu2 %v2884_v29  ;;  %v2948_v29 = vor.u32 %v3516_v13, %v2947_v12  ;;  %v2680_v36 = vor.u32 %v3446_v27, %v2677_v28  ;;  %v2357_v12 = vld [vmem:[#allocation7 + $0x78] sm:$0xf0]  ;;  %v3398_v13 = vld [vmem:[#allocation7 + $0x16c] sm:$0xf]  ;;  %v2616_v27 = vor.u32 %v3430_v15, %v2613_v16 }
  0xae   :  { %1751 = vmatpush.bf16.msra.mxu3 %v3012_v33  ;;  %v3171_v33 = vld [vmem:[#allocation7 + $0x6c8] sm:$0xf]  ;;  %v2488_v23 = vor.u32 %v3398_v13, %v2485_v14  ;;  %v2341_v28 = vld [vmem:[#allocation7 + $0x58] sm:$0xf0] }
  0xaf   :  { %1713 = vmatpush.bf16.msra.mxu0 %v2612_v42  ;;  %v2533_v42 = vld [vmem:[#allocation7 + $0x1d8] sm:$0xf0]  ;;  %v3172_v45 = vor.u32 %v3572_v34, %v3171_v33 }
  0xb0   :  { %1726 = vmatpush.bf16.msra.mxu1 %v2740_v43  ;;  %v3442_v43 = vld [vmem:[#allocation7 + $0x2cc] sm:$0xf]  ;;  %v2536_v47 = vor.u32 %v3410_v39, %v2533_v42  ;;  %v3552_v39 = vld [vmem:[#allocation7 + $0x634] sm:$0xf0] }
  0xb1   :  { %1739 = vmatpush.bf16.msra.mxu2 %v2868_v44  ;;  %v2661_v44 = vld [vmem:[#allocation7 + $0x2d8] sm:$0xf0]  ;;  %v3358_v42 = vld [vmem:[#allocation7 + $0x2c] sm:$0xf]  ;;  %v3092_v50 = vor.u32 %v3552_v39, %v3091_v38 }
  0xb2   :  { %1752 = vmatpush.bf16.msra.mxu3 %v2996_v48  ;;  %v3155_v48 = vld [vmem:[#allocation7 + $0x6a8] sm:$0xf]  ;;  %v2664_v51 = vor.u32 %v3442_v43, %v2661_v44  ;;  %v2773_v38 = vld [vmem:[#allocation7 + $0x3b8] sm:$0xf0]  ;;  %v3502_v39 = vld [vmem:[#allocation7 + $0x4ac] sm:$0xf] }
  0xb3   :  { %1714 = vmatpush.bf16.msra.mxu0 %v2596_v54  ;;  %v2517_v54 = vld [vmem:[#allocation7 + $0x1b8] sm:$0xf0]  ;;  %v3156_v57 = vor.u32 %v3568_v49, %v3155_v48  ;;  %v3422_v48 = vld [vmem:[#allocation7 + $0x22c] sm:$0xf] }
  0xb4   :  { %1727 = vmatpush.bf16.msra.mxu1 %v2724_v55  ;;  %v3438_v55 = vld [vmem:[#allocation7 + $0x2ac] sm:$0xf]  ;;  %v2520_v59 = vor.u32 %v3406_v53, %v2517_v54  ;;  %v2581_v49 = vld [vmem:[#allocation7 + $0x238] sm:$0xf0] }
  0xb5   :  { %1740 = vmatpush.bf16.msra.mxu2 %v2852_v56  ;;  %v2645_v56 = vld [vmem:[#allocation7 + $0x2b8] sm:$0xf0] }
  0xb6   :  { %1753 = vmatpush.bf16.msra.mxu3 %v2980_v60  ;;  %v3139_v60 = vld [vmem:[#allocation7 + $0x688] sm:$0xf]  ;;  %v2648_v63 = vor.u32 %v3438_v55, %v2645_v56  ;;  %v3354_v55 = vld [vmem:[#allocation7 + $0xc] sm:$0xf]  ;;  %v2309_v56 = vld [vmem:[#allocation7 + $0x18] sm:$0xf0] }
  0xb7   :  { %1715 = vmatpush.bf16.msra.mxu0 %v2580_v2  ;;  %v2501_v2 = vld [vmem:[#allocation7 + $0x198] sm:$0xf0] }
  0xb8   :  { %1728 = vmatpush.bf16.msra.mxu1 %v2708_v5  ;;  %v3140_v5 = vor.u32 %v3564_v61, %v3139_v60  ;;  %v2504_v7 = vor.u32 %v3402_v1, %v2501_v2  ;;  %v2437_v60 = vld [vmem:[#allocation7 + $0x118] sm:$0xf0]  ;;  %v3418_v61 = vld [vmem:[#allocation7 + $0x20c] sm:$0xf] }
  0xb9   :  { %1741 = vmatpush.bf16.msra.mxu2 %v2836_v6  ;;  %v2376_v6 = vor.u32 %v3370_v62, %v2373_v0  ;;  %v2565_v62 = vld [vmem:[#allocation7 + $0x218] sm:$0xf0]  ;;  %v3478_v0 = vld [vmem:[#allocation7 + $0x3ec] sm:$0xf] }
  0xba   :  { %1754 = vmatpush.bf16.msra.mxu3 %v2964_v10  ;;  %v3366_v10 = vld [vmem:[#allocation7 + $0x6c] sm:$0xf]  ;;  %v2805_v1 = vld [vmem:[#allocation7 + $0x3f8] sm:$0xf0]  ;;  %v2568_v13 = vor.u32 %v3418_v61, %v2565_v62  ;;  %v3938_v61 = vld [vmem:[#allocation8] sm:$0xf] }
  0xbb   :  { %1716 = vmatpush.bf16.msra.mxu0 %v2564_v17  ;;  %v3124_v17 = vor.u32 %v3560_v9, %v3123_v8  ;;  %v2360_v21 = vor.u32 %v3366_v10, %v2357_v12  ;;  %v3926_v34 = vpop.f32.mrf.mxu0  ;;  %v3510_v2 = vld [vmem:[#allocation7 + $0x4ec] sm:$0xf]  ;;  %v2312_v8 = vor.u32 %v3354_v55, %v2309_v56  ;;  %v2808_v14 = vor.u32 %v3478_v0, %v2805_v1  ;;  %v2885_v56 = vld [vmem:[#allocation7 + $0x498] sm:$0xf0] }
  0xbc   :  { %1729 = vmatpush.bf16.msra.mxu1 %v2692_v25  ;;  %v3556_v25 = vld [vmem:[#allocation7 + $0x654] sm:$0xf0]  ;;  %v3928_v43 = vpop.f32.mrf.mxu1  ;;  %v3574_v10 = vld [vmem:[#allocation7 + $0x6ec] sm:$0xf]  ;;  %v2936_v15 = vor.u32 %v3510_v2, %v2933_v4 }
  0xbd   :  { %1742 = vmatpush.bf16.msra.mxu2 %v2820_v26  ;;  %v3362_v26 = vld [vmem:[#allocation7 + $0x4c] sm:$0xf]  ;;  %v3108_v33 = vor.u32 %v3556_v25, %v3107_v24  ;;  %v2917_v25 = vld [vmem:[#allocation7 + $0x4d8] sm:$0xf0] }
  0xbe   :  { %1755 = vmatpush.bf16.msra.mxu3 %v2948_v29  ;;  %1717 = vmatmul.bf16.vlgmr.msra.gmra.mxu0 %v3892_v18  ;;  %v3394_v29 = vld [vmem:[#allocation7 + $0x14c] sm:$0xf]  ;;  %v2344_v35 = vor.u32 %v3362_v26, %v2341_v28 }
  0xbf   :  { %1761 = vmatpush.bf16.msrb.mxu0 %v3188_v30  ;;  %1730 = vmatmul.bf16.vlgmr.msra.gmra.mxu1 %v3896_v20  ;;  %v2469_v30 = vld [vmem:[#allocation7 + $0x158] sm:$0xf0]  ;;  %v3538_v26 = vld [vmem:[#allocation7 + $0x5cc] sm:$0xf] }
  0xc0   :  { %1774 = vmatpush.bf16.msrb.mxu1 %v2424_v31  ;;  %1743 = vmatmul.bf16.vlgmr.msra.gmra.mxu2 %v3906_v40  ;;  %v3426_v31 = vld [vmem:[#allocation7 + $0x24c] sm:$0xf] }
  0xc1   :  { %1787 = vmatpush.bf16.msrb.mxu2 %v2552_v32  ;;  %1756 = vmatmul.bf16.vlgmr.msra.gmra.mxu3 %v3908_v41  ;;  %v2597_v32 = vld [vmem:[#allocation7 + $0x258] sm:$0xf0]  ;;  %v3570_v28 = vld [vmem:[#allocation7 + $0x6cc] sm:$0xf] }
  0xc2   :  { %1800 = vmatpush.bf16.msrb.mxu3 %v2680_v36  ;;  %v2472_v36 = vor.u32 %v3394_v29, %v2469_v30  ;;  %v2600_v44 = vor.u32 %v3426_v31, %v2597_v32  ;;  %v3173_v29 = vld [vmem:[#allocation7 + $0x6d8] sm:$0xf0]  ;;  %v3462_v2 = vld [vmem:[#allocation7 + $0x36c] sm:$0xf] }
  0xc3   :  { %1762 = vmatpush.bf16.msrb.mxu0 %v3172_v45  ;;  %v2325_v45 = vld [vmem:[#allocation7 + $0x38] sm:$0xf0]  ;;  %v3494_v4 = vld [vmem:[#allocation7 + $0x46c] sm:$0xf] }
  0xc4   :  { %1775 = vmatpush.bf16.msrb.mxu1 %v2408_v46  ;;  %v3390_v46 = vld [vmem:[#allocation7 + $0x12c] sm:$0xf]  ;;  %v2328_v53 = vor.u32 %v3358_v42, %v2325_v45  ;;  %v1525_v12 = vpop.f32.mrf.mxu1  ;;  %v3176_v42 = vor.u32 %v3570_v28, %v3173_v29  ;;  %v3109_v28 = vld [vmem:[#allocation7 + $0x658] sm:$0xf0] }
  0xc5   :  { %1788 = vmatpush.bf16.msrb.mxu2 %v2536_v47  ;;  %v2453_v47 = vld [vmem:[#allocation7 + $0x138] sm:$0xf0]  ;;  %v3534_v45 = vld [vmem:[#allocation7 + $0x5ac] sm:$0xf] }
  0xc6   :  { %1801 = vmatpush.bf16.msrb.mxu3 %v2664_v51  ;;  %v3075_v51 = vld [vmem:[#allocation7 + $0x608] sm:$0xf]  ;;  %v2456_v54 = vor.u32 %v3390_v46, %v2453_v47  ;;  %v3029_v46 = vld [vmem:[#allocation7 + $0x5b8] sm:$0xf0]  ;;  %v3566_v47 = vld [vmem:[#allocation7 + $0x6ac] sm:$0xf] }
  0xc7   :  { %1763 = vmatpush.bf16.msrb.mxu0 %v3156_v57  ;;  %v3386_v57 = vld [vmem:[#allocation7 + $0x10c] sm:$0xf]  ;;  %v3076_v3 = vor.u32 %v3548_v52, %v3075_v51  ;;  %v3032_v51 = vor.u32 %v3534_v45, %v3029_v46  ;;  %v2837_v45 = vld [vmem:[#allocation7 + $0x438] sm:$0xf0] }
  0xc8   :  { %1776 = vmatpush.bf16.msrb.mxu1 %v2392_v58  ;;  %v2440_v9 = vor.u32 %v3386_v57, %v2437_v60  ;;  %v3466_v52 = vld [vmem:[#allocation7 + $0x38c] sm:$0xf]  ;;  %v3141_v60 = vld [vmem:[#allocation7 + $0x698] sm:$0xf0] }
  0xc9   :  { %1789 = vmatpush.bf16.msrb.mxu2 %v2520_v59  ;;  %v2584_v59 = vor.u32 %v3422_v48, %v2581_v49  ;;  %v3157_v48 = vld [vmem:[#allocation7 + $0x6b8] sm:$0xf0]  ;;  %v3530_v57 = vld [vmem:[#allocation7 + $0x58c] sm:$0xf] }
  0xca   :  { %1802 = vmatpush.bf16.msrb.mxu3 %v2648_v63  ;;  %v3160_v55 = vor.u32 %v3566_v47, %v3157_v48  ;;  %v3518_v46 = vld [vmem:[#allocation7 + $0x52c] sm:$0xf]  ;;  %v2965_v47 = vld [vmem:[#allocation7 + $0x538] sm:$0xf0] }
  0xcb   :  { %1764 = vmatpush.bf16.msrb.mxu0 %v3140_v5  ;;  %v3542_v5 = vld [vmem:[#allocation7 + $0x5ec] sm:$0xf] }
  0xcc   :  { %1777 = vmatpush.bf16.msrb.mxu1 %v2376_v6  ;;  %v3061_v6 = vld [vmem:[#allocation7 + $0x5f8] sm:$0xf0]  ;;  %v3550_v48 = vld [vmem:[#allocation7 + $0x62c] sm:$0xf] }
  0xcd   :  { %1790 = vmatpush.bf16.msrb.mxu2 %v2504_v7  ;;  %v3930_v58 = vpop.f32.mrf.mxu2  ;;  %v1512_v7 = vpop.f32.mrf.mxu0  ;;  %v3064_v16 = vor.u32 %v3542_v5, %v3061_v6  ;;  %v2869_v6 = vld [vmem:[#allocation7 + $0x478] sm:$0xf0] }
  0xce   :  { %1803 = vmatpush.bf16.msrb.mxu3 %v2632_v11  ;;  %v3932_v63 = vpop.f32.mrf.mxu3  ;;  %v3189_v11 = vld [vmem:[#allocation7 + $0x6f8] sm:$0xf0]  ;;  %v3526_v7 = vld [vmem:[#allocation7 + $0x56c] sm:$0xf] }
  0xcf   :  { %1765 = vmatpush.bf16.msrb.mxu0 %v3124_v17  ;;  %v3474_v17 = vld [vmem:[#allocation7 + $0x3cc] sm:$0xf]  ;;  %v3192_v24 = vor.u32 %v3574_v10, %v3189_v11  ;;  %v3125_v10 = vld [vmem:[#allocation7 + $0x678] sm:$0xf0]  ;;  %v348_v11 = vperm.slane %v3938_v61, 0 }
  0xd0   :  { %1778 = vmatpush.bf16.msrb.mxu1 %v2360_v21  ;;  %v2789_v21 = vld [vmem:[#allocation7 + $0x3d8] sm:$0xf0] }
  0xd1   :  { %1791 = vmatpush.bf16.msrb.mxu2 %v2488_v23  ;;  %v3506_v23 = vld [vmem:[#allocation7 + $0x4cc] sm:$0xf]  ;;  %v2792_v31 = vor.u32 %v3474_v17, %v2789_v21 }
  0xd2   :  { %1804 = vmatpush.bf16.msrb.mxu3 %v2616_v27  ;;  %v3045_v27 = vld [vmem:[#allocation7 + $0x5d8] sm:$0xf0]  ;;  %v3490_v17 = vld [vmem:[#allocation7 + $0x44c] sm:$0xf] }
  0xd3   :  { %1766 = vmatpush.bf16.msrb.mxu0 %v3108_v33  ;;  %v2920_v33 = vor.u32 %v3506_v23, %v2917_v25  ;;  %v3522_v25 = vld [vmem:[#allocation7 + $0x54c] sm:$0xf] }
  0xd4   :  { %1779 = vmatpush.bf16.msrb.mxu1 %v2344_v35  ;;  %v3048_v35 = vor.u32 %v3538_v26, %v3045_v27  ;;  %v2981_v26 = vld [vmem:[#allocation7 + $0x558] sm:$0xf0]  ;;  %v3554_v27 = vld [vmem:[#allocation7 + $0x64c] sm:$0xf] }
  0xd5   :  { %1792 = vmatpush.bf16.msrb.mxu2 %v2472_v36  ;;  %v1538_v30 = vpop.f32.mrf.mxu2  ;;  %v3470_v36 = vld [vmem:[#allocation7 + $0x3ac] sm:$0xf] }
  0xd6   :  { %1805 = vmatpush.bf16.msrb.mxu3 %v2600_v44  ;;  %v1551_v32 = vpop.f32.mrf.mxu3  ;;  %v2901_v44 = vld [vmem:[#allocation7 + $0x4b8] sm:$0xf0]  ;;  %v2776_v49 = vor.u32 %v3470_v36, %v2773_v38  ;;  %v3454_v36 = vld [vmem:[#allocation7 + $0x32c] sm:$0xf] }
  0xd7   :  { %1767 = vmatpush.bf16.msrb.mxu0 %v3092_v50  ;;  %v2904_v50 = vor.u32 %v3502_v39, %v2901_v44  ;;  %v2709_v38 = vld [vmem:[#allocation7 + $0x338] sm:$0xf0]  ;;  %v3486_v39 = vld [vmem:[#allocation7 + $0x42c] sm:$0xf]  ;;  %v3112_v44 = vor.u32 %v3554_v27, %v3109_v28  ;;  %v3587_v27 = vld [vmem:[#allocation10 + $0x50] sm:$0xff] }
  0xd8   :  { %1780 = vmatpush.bf16.msrb.mxu1 %v2328_v53  ;;  %v2757_v53 = vld [vmem:[#allocation7 + $0x398] sm:$0xf0] }
  0xd9   :  { %1793 = vmatpush.bf16.msrb.mxu2 %v2456_v54  ;;  %v3498_v54 = vld [vmem:[#allocation7 + $0x48c] sm:$0xf] }
  0xda   :  { %1806 = vmatpush.bf16.msrb.mxu3 %v2584_v59  ;;  %v3562_v59 = vld [vmem:[#allocation7 + $0x68c] sm:$0xf]  ;;  %v2888_v0 = vor.u32 %v3498_v54, %v2885_v56  ;;  %v2693_v54 = vld [vmem:[#allocation7 + $0x318] sm:$0xf0] }
  0xdb   :  { %1768 = vmatpush.bf16.msrb.mxu0 %v3076_v3  ;;  %v3940_v62 = vpop.f32.mrf.mxu0  ;;  %v2741_v3 = vld [vmem:[#allocation7 + $0x378] sm:$0xf0]  ;;  %v3144_v5 = vor.u32 %v3562_v59, %v3141_v60  ;;  %v3514_v59 = vld [vmem:[#allocation7 + $0x50c] sm:$0xf] }
  0xdc   :  { %1781 = vmatpush.bf16.msrb.mxu1 %v2312_v8  ;;  %v2997_v8 = vld [vmem:[#allocation7 + $0x578] sm:$0xf0]  ;;  %v2744_v12 = vor.u32 %v3462_v2, %v2741_v3 }
  0xdd   :  { %1794 = vmatpush.bf16.msrb.mxu2 %v2440_v9  ;;  %v3558_v9 = vld [vmem:[#allocation7 + $0x66c] sm:$0xf]  ;;  %v2949_v60 = vld [vmem:[#allocation7 + $0x518] sm:$0xf0] }
  0xde   :  { %1807 = vmatpush.bf16.msrb.mxu3 %v2568_v13  ;;  %1769 = vmatmul.bf16.vlgmr.msrb.gmra.mxu0 %v3904_v37  ;;  %v2872_v13 = vor.u32 %v3494_v4, %v2869_v6  ;;  %v3128_v23 = vor.u32 %v3558_v9, %v3125_v10  ;;  %v2952_v4 = vor.u32 %v3514_v59, %v2949_v60  ;;  %v3583_v9 = vld [vmem:[#allocation10 + $0x30] sm:$0xff]  ;;  %v3597_v60 = vld [vmem:[#allocation10 + $0xa0] sm:$0xff] }
  0xdf   :  { %1813 = vmatpush.bf16.msra.mxu0 %v2808_v14  ;;  %1782 = vmatmul.bf16.vlgmr.msrb.gmra.mxu1 %v3894_v19  ;;  %v3942_v19 = vpop.f32.mrf.mxu1  ;;  %v3000_v14 = vor.u32 %v3526_v7, %v2997_v8  ;;  %v3584_v7 = vld [vmem:[#allocation10 + $0x38] sm:$0xff]  ;;  %v3591_v10 = vld [vmem:[#allocation10 + $0x70] sm:$0xff] }
  0xe0   :  { %1826 = vmatpush.bf16.msra.mxu1 %v2936_v15  ;;  %1795 = vmatmul.bf16.vlgmr.msrb.gmra.mxu2 %v3898_v22  ;;  %v3013_v22 = vld [vmem:[#allocation7 + $0x598] sm:$0xf0]  ;;  %v3458_v15 = vld [vmem:[#allocation7 + $0x34c] sm:$0xf] }
  0xe1   :  { %1839 = vmatpush.bf16.msra.mxu2 %v3064_v16  ;;  %1808 = vmatmul.bf16.vlgmr.msrb.gmra.mxu3 %v3892_v18  ;;  %v2760_v18 = vor.u32 %v3466_v52, %v2757_v53  ;;  %v3016_v1 = vor.u32 %v3530_v57, %v3013_v22  ;;  %v2725_v16 = vld [vmem:[#allocation7 + $0x358] sm:$0xf0]  ;;  %v2968_v52 = vor.u32 %v3518_v46, %v2965_v47  ;;  %v3450_v53 = vld [vmem:[#allocation7 + $0x30c] sm:$0xf] }
  0xe2   :  { %1852 = vmatpush.bf16.msra.mxu3 %v3192_v24  ;;  %v2853_v24 = vld [vmem:[#allocation7 + $0x458] sm:$0xf0]  ;;  %v2728_v30 = vor.u32 %v3458_v15, %v2725_v16  ;;  %v2696_v2 = vor.u32 %v3450_v53, %v2693_v54  ;;  %v3589_v15 = vld [vmem:[#allocation10 + $0x60] sm:$0xff]  ;;  %v3599_v53 = vld [vmem:[#allocation10 + $0xb0] sm:$0xff] }
  0xe3   :  { %1814 = vmatpush.bf16.msra.mxu0 %v2792_v31  ;;  %v3945_v21 = vpop.f32.mrf.mxu2  ;;  %v1564_v31 = vpop.f32.mrf.mxu0  ;;  %v2821_v22 = vld [vmem:[#allocation7 + $0x418] sm:$0xf0]  ;;  %v1865_v16 = vld [vmem:[#allocation5] sm:$0xff] }
  0xe4   :  { %1827 = vmatpush.bf16.msra.mxu1 %v2920_v33  ;;  %v3947_v29 = vpop.f32.mrf.mxu3  ;;  %v2856_v33 = vor.u32 %v3490_v17, %v2853_v24  ;;  %v349_v24 = vperm.slane %v3938_v61, 1  ;;  %v3586_v31 = vld [vmem:[#allocation10 + $0x48] sm:$0xff] }
  0xe5   :  { %1840 = vmatpush.bf16.msra.mxu2 %v3048_v35  ;;  %v2984_v35 = vor.u32 %v3522_v25, %v2981_v26 }
  0xe6   :  { %1853 = vmatpush.bf16.msra.mxu3 %v3176_v42  ;;  %v1511_v42 = vadd.f32 %v3926_v34, %v348_v11  ;;  %v3582_v11 = vld [vmem:[#allocation10 + $0x28] sm:$0xff]  ;;  %v1602_v28 = vadd.f32 %v3947_v29, %v349_v24 }
  0xe7   :  { %1815 = vmatpush.bf16.msra.mxu0 %v2776_v49  ;;  %v1577_v32 = vpop.f32.mrf.mxu1  ;;  %v3093_v49 = vld [vmem:[#allocation7 + $0x638] sm:$0xf0] }
  0xe8   :  { %1828 = vmatpush.bf16.msra.mxu1 %v2904_v50  ;;  %v2712_v50 = vor.u32 %v3454_v36, %v2709_v38  ;;  %v1524_v57 = vadd.f32 %v3928_v43, %v1511_v42  ;;  %v3096_v34 = vor.u32 %v3550_v48, %v3093_v49  ;;  %v3592_v43 = vld [vmem:[#allocation10 + $0x78] sm:$0xff]  ;;  %v3585_v36 = vld [vmem:[#allocation10 + $0x40] sm:$0xff] }
  0xe9   :  { %1841 = vmatpush.bf16.msra.mxu2 %v3032_v51  ;;  %v2840_v51 = vor.u32 %v3486_v39, %v2837_v45  ;;  %v1866_v48 = vld [vmem:[#allocation5 + $0x8] sm:$0xff] }
  0xea   :  { %1854 = vmatpush.bf16.msra.mxu3 %v3160_v55  ;;  %v3482_v55 = vld [vmem:[#allocation7 + $0x40c] sm:$0xf] }
  0xeb   :  { %1816 = vmatpush.bf16.msra.mxu0 %v2760_v18  ;;  %v1590_v56 = vpop.f32.mrf.mxu2  ;;  %v3546_v18 = vld [vmem:[#allocation7 + $0x60c] sm:$0xf]  ;;  %v2824_v3 = vor.u32 %v3482_v55, %v2821_v22 }
  0xec   :  { %1829 = vmatpush.bf16.msra.mxu1 %v2888_v0  ;;  %v3077_v0 = vld [vmem:[#allocation7 + $0x618] sm:$0xf0] }
  0xed   :  { %1842 = vmatpush.bf16.msra.mxu2 %v3016_v1  ;;  %v1603_v1 = vpop.f32.mrf.mxu3  ;;  %v3080_v6 = vor.u32 %v3546_v18, %v3077_v0  ;;  %v3596_v0 = vld [vmem:[#allocation10 + $0x98] sm:$0xff] }
  0xee   :  { %1855 = vmatpush.bf16.msra.mxu3 %v3144_v5  ;;  %v1537_v5 = vadd.f32 %v3930_v58, %v1524_v57  ;;  %v3598_v57 = vld [vmem:[#allocation10 + $0xa8] sm:$0xff] }
  0xef   :  { %1817 = vmatpush.bf16.msra.mxu0 %v2744_v12  ;;  %v3590_v12 = vld [vmem:[#allocation10 + $0x68] sm:$0xff] }
  0xf0   :  { %1830 = vmatpush.bf16.msra.mxu1 %v2872_v13  ;;  %v1550_v8 = vadd.f32 %v3932_v63, %v1537_v5  ;;  %v3581_v13 = vld [vmem:[#allocation10 + $0x20] sm:$0xff]  ;;  %v3594_v5 = vld [vmem:[#allocation10 + $0x88] sm:$0xff] }
  0xf1   :  { %1843 = vmatpush.bf16.msra.mxu2 %v3000_v14 }
  0xf2   :  { %1856 = vmatpush.bf16.msra.mxu3 %v3128_v23  ;;  %v1563_v58 = vadd.f32 %v3940_v62, %v1550_v8  ;;  %v3588_v62 = vld [vmem:[#allocation10 + $0x58] sm:$0xff] }
  0xf3   :  { %1818 = vmatpush.bf16.msra.mxu0 %v2728_v30 }
  0xf4   :  { %1831 = vmatpush.bf16.msra.mxu1 %v2856_v33  ;;  %v1576_v63 = vadd.f32 %v3942_v19, %v1563_v58  ;;  %v3579_v19 = vld [vmem:[#allocation10 + $0x10] sm:$0xff] }
  0xf5   :  { %1844 = vmatpush.bf16.msra.mxu2 %v2984_v35  ;;  %v3577_v35 = vld [vmem:[#allocation10] sm:$0xff] }
  0xf6   :  { %1857 = vmatpush.bf16.msra.mxu3 %v3112_v44 }
  0xf7   :  { %1819 = vmatpush.bf16.msra.mxu0 %v2712_v50 }
  0xf8   :  { %1832 = vmatpush.bf16.msra.mxu1 %v2840_v51  ;;  %v3600_v51 = vld [vmem:[#allocation10 + $0xb8] sm:$0xff] }
  0xf9   :  { %1845 = vmatpush.bf16.msra.mxu2 %v2968_v52 }
  0xfa   :  { %1858 = vmatpush.bf16.msra.mxu3 %v3096_v34 }
  0xfb   :  { %1820 = vmatpush.bf16.msra.mxu0 %v2696_v2  ;;  %v1614_v14 = vpop.f32.mrf.mxu0  ;;  %v3595_v2 = vld [vmem:[#allocation10 + $0x90] sm:$0xff] }
  0xfc   :  { %1833 = vmatpush.bf16.msra.mxu1 %v2824_v3  ;;  %v1615_v33 = vadd.f32 %v1614_v14, %v1602_v28  ;;  %v3603_v28 = vld [vmem:[#allocation10 + $0xd0] sm:$0xff] }
  0xfd   :  { %1846 = vmatpush.bf16.msra.mxu2 %v2952_v4  ;;  %v350_v4 = vperm.slane %v3938_v61, 2 }
  0xfe   :  { %1859 = vmatpush.bf16.msra.mxu3 %v3080_v6  ;;  %1821 = vmatmul.bf16.vlgmr.msra.gmra.mxu0 %v3896_v20  ;;  %v1627_v20 = vpop.f32.mrf.mxu1 }
  0xff   :  { %2141 = vmatpush.bf16.msrb.mxu0 %v3584_v7  ;;  %1834 = vmatmul.bf16.vlgmr.msra.gmra.mxu1 %v3906_v40  ;;  %v1589_v40 = vadd.f32 %v3945_v21, %v1576_v63  ;;  %v3578_v21 = vld [vmem:[#allocation10 + $0x8] sm:$0xff]  ;;  %v1628_v39 = vadd.f32 %v1627_v20, %v1615_v33 }
 0x100   :  { %2154 = vmatpush.bf16.msrb.mxu1 %v3592_v43  ;;  %1847 = vmatmul.bf16.vlgmr.msra.gmra.mxu2 %v3908_v41  ;;  %v3580_v41 = vld [vmem:[#allocation10 + $0x18] sm:$0xff]  ;;  %v3606_v20 = vld [vmem:[#allocation10 + $0xe8] sm:$0xff] }
 0x101   :  { %1860 = vmatmul.bf16.vlgmr.msra.gmra.mxu3 %v3904_v37  ;;  %v1869_v23 = vmul.f32 %v1865_v16, %v1589_v40  ;;  %2167 = vmatpush.bf16.msrb.mxu2 %v3600_v51 }
 0x103   :  { %2142 = vmatpush.bf16.msrb.mxu0 %v3583_v9  ;;  %v1640_v37 = vpop.f32.mrf.mxu2  ;;  %v1616_v25 = vpop.f32.mrf.mxu0  ;;  %3630 = vtanh.f32 %v1869_v23  ;;  %v3593_v9 = vld [vmem:[#allocation10 + $0x80] sm:$0xff] }
 0x104   :  { %2155 = vmatpush.bf16.msrb.mxu1 %v3591_v10  ;;  %v1653_v17 = vpop.f32.mrf.mxu3  ;;  %v1641_v44 = vadd.f32 %v1640_v37, %v1628_v39  ;;  %v1867_v37 = vld [vmem:[#allocation5 + $0x10] sm:$0xff] }
 0x105   :  { %2168 = vmatpush.bf16.msrb.mxu2 %v3599_v53 }
 0x106   :  { %v1629_v26 = vpop.f32.mrf.mxu1  ;;  %v1654_v45 = vadd.f32 %v1653_v17, %v1641_v44 }
 0x107   :  { %2143 = vmatpush.bf16.msrb.mxu0 %v3582_v11  ;;  %v3608_v11 = vld [vmem:[#allocation10 + $0xf8] sm:$0xff] }
 0x108   :  { %2156 = vmatpush.bf16.msrb.mxu1 %v3590_v12  ;;  %2180 = vmatpush.bf16.msrb.mxu3 %v3608_v11 }
 0x109   :  { %v3631_v38 = vpop.eup %3630  ;;  %2169 = vmatpush.bf16.msrb.mxu2 %v3598_v57 }
 0x10a   :  { %v1877_v42 = vpack.c.bf16 %v3631_v38, %v3631_v38  ;;  %v351_v38 = vperm.slane %v3938_v61, 3 }
 0x10b   :  { %2144 = vmatpush.bf16.msrb.mxu0 %v3581_v13  ;;  %v1642_v30 = vpop.f32.mrf.mxu2  ;;  %v3607_v13 = vld [vmem:[#allocation10 + $0xf0] sm:$0xff] }
 0x10c   :  { %2157 = vmatpush.bf16.msrb.mxu1 %v3589_v15  ;;  %v1655_v32 = vpop.f32.mrf.mxu3  ;;  %2181 = vmatpush.bf16.msrb.mxu3 %v3607_v13 }
 0x10d   :  { %2170 = vmatpush.bf16.msrb.mxu2 %v3597_v60  ;;  %v3602_v32 = vld [vmem:[#allocation10 + $0xc8] sm:$0xff]  ;;  %v3628_v60 = vld [vmem:[%s3978_s5] ss:$0 sm:$0xff] }
 0x10f   :  { %2145 = vmatpush.bf16.msrb.mxu0 %v3580_v41 }
 0x110   :  { %2158 = vmatpush.bf16.msrb.mxu1 %v3588_v62  ;;  %2182 = vmatpush.bf16.msrb.mxu3 %v3606_v20  ;;  %v3605_v62 = vld [vmem:[#allocation10 + $0xe0] sm:$0xff] }
 0x111   :  { %2171 = vmatpush.bf16.msrb.mxu2 %v3596_v0 }
 0x113   :  { %2146 = vmatpush.bf16.msrb.mxu0 %v3579_v19  ;;  %v3604_v19 = vld [vmem:[#allocation10 + $0xd8] sm:$0xff] }
 0x114   :  { %2159 = vmatpush.bf16.msrb.mxu1 %v3587_v27  ;;  %2183 = vmatpush.bf16.msrb.mxu3 %v3605_v62 }
 0x115   :  { %2172 = vmatpush.bf16.msrb.mxu2 %v3595_v2 }
 0x117   :  { %2147 = vmatpush.bf16.msrb.mxu0 %v3578_v21 }
 0x118   :  { %2160 = vmatpush.bf16.msrb.mxu1 %v3586_v31  ;;  %2184 = vmatpush.bf16.msrb.mxu3 %v3604_v19 }
 0x119   :  { %2173 = vmatpush.bf16.msrb.mxu2 %v3594_v5  ;;  %v3614_v5 = vld [vmem:[#allocation11 + $0x28] sm:$0xff] }
 0x11b   :  { %2148 = vmatpush.bf16.msrb.mxu0 %v3577_v35  ;;  %v1666_v29 = vpop.f32.mrf.mxu0 }
 0x11c   :  { %2161 = vmatpush.bf16.msrb.mxu1 %v3585_v36  ;;  %v1667_v46 = vadd.f32 %v1666_v29, %v1654_v45  ;;  %v1679_v47 = vpop.f32.mrf.mxu1  ;;  %2185 = vmatpush.bf16.msrb.mxu3 %v3603_v28  ;;  %v3601_v36 = vld [vmem:[#allocation10 + $0xc0] sm:$0xff] }
 0x11d   :  { %2174 = vmatpush.bf16.msrb.mxu2 %v3593_v9 }
 0x11e   :  { %2149 = vmatmul.bf16.vlgmr.msrb.gmra.mxu0 %v1877_v42  ;;  %v1680_v49 = vadd.f32 %v1679_v47, %v1667_v46 }
 0x120   :  { %v1870_v50 = vmul.f32 %v1866_v48, %v1680_v49  ;;  %2186 = vmatpush.bf16.msrb.mxu3 %v3602_v32 }
 0x122   :  { %3632 = vtanh.f32 %v1870_v50 }
 0x123   :  { %v1692_v52 = vpop.f32.mrf.mxu2  ;;  %v1668_v55 = vpop.f32.mrf.mxu0 }
 0x124   :  { %v1705_v54 = vpop.f32.mrf.mxu3  ;;  %v1681_v56 = vpop.f32.mrf.mxu1  ;;  %v1693_v43 = vadd.f32 %v1692_v52, %v350_v4  ;;  %2187 = vmatpush.bf16.msrb.mxu3 %v3601_v36  ;;  %v1868_v52 = vld [vmem:[#allocation5 + $0x18] sm:$0xff] }
 0x125   :  { %v3615_v4 = vld [vmem:[#allocation11 + $0x30] sm:$0xff] }
 0x126   :  { %v1706_v58 = vadd.f32 %v1705_v54, %v1693_v43 }
 0x128   :  { %v3633_v34 = vpop.eup %3632 }
 0x129   :  { %v1878_v22 = vpack.c.bf16 %v3633_v34, %v3633_v34 }
 0x12b   :  { %v1694_v59 = vpop.f32.mrf.mxu2  ;;  %2162 = vmatmul.bf16.vlgmr.msrb.gmra.mxu1 %v1878_v22 }
 0x12c   :  { %v1707_v18 = vpop.f32.mrf.mxu3 }
 0x13b   :  { %v1718_v1 = vpop.f32.mrf.mxu0 }
 0x13c   :  { %v1731_v3 = vpop.f32.mrf.mxu1  ;;  %v1719_v14 = vadd.f32 %v1718_v1, %v1706_v58  ;;  %v3609_v58 = vld [vmem:[#allocation11] sm:$0xff] }
 0x13e   :  { %v1732_v15 = vadd.f32 %v1731_v3, %v1719_v14  ;;  %v3616_v3 = vld [vmem:[#allocation11 + $0x38] sm:$0xff] }
 0x13f   :  { %2263 = vmatpush.bf16.msra.mxu0 %v3616_v3 }
 0x143   :  { %v1744_v6 = vpop.f32.mrf.mxu2  ;;  %v1720_v8 = vpop.f32.mrf.mxu0  ;;  %2264 = vmatpush.bf16.msra.mxu0 %v3615_v4 }
 0x144   :  { %v1757_v7 = vpop.f32.mrf.mxu3  ;;  %v1733_v10 = vpop.f32.mrf.mxu1  ;;  %v1745_v40 = vadd.f32 %v1744_v6, %v1732_v15  ;;  %v3613_v6 = vld [vmem:[#allocation11 + $0x20] sm:$0xff]  ;;  %v3611_v8 = vld [vmem:[#allocation11 + $0x10] sm:$0xff] }
 0x145   :  { %v3610_v10 = vld [vmem:[#allocation11 + $0x8] sm:$0xff]  ;;  %v3629_v15 = vld [vmem:[%s3980_s7] ss:$0 sm:$0xff] }
 0x146   :  { %v1758_v41 = vadd.f32 %v1757_v7, %v1745_v40  ;;  %v3612_v7 = vld [vmem:[#allocation11 + $0x18] sm:$0xff] }
 0x147   :  { %2265 = vmatpush.bf16.msra.mxu0 %v3614_v5 }
 0x14b   :  { %v1746_v12 = vpop.f32.mrf.mxu2  ;;  %2266 = vmatpush.bf16.msra.mxu0 %v3613_v6 }
 0x14c   :  { %v1759_v63 = vpop.f32.mrf.mxu3 }
 0x14f   :  { %2267 = vmatpush.bf16.msra.mxu0 %v3612_v7 }
 0x153   :  { %2268 = vmatpush.bf16.msra.mxu0 %v3611_v8 }
 0x157   :  { %2269 = vmatpush.bf16.msra.mxu0 %v3610_v10 }
 0x15b   :  { %v1770_v16 = vpop.f32.mrf.mxu0  ;;  %2270 = vmatpush.bf16.msra.mxu0 %v3609_v58 }
 0x15c   :  { %v1771_v17 = vadd.f32 %v1770_v16, %v1758_v41  ;;  %v1783_v23 = vpop.f32.mrf.mxu1 }
 0x15d   :  { %v1784_v39 = vadd.f32 %v1783_v23, %v351_v38 }
 0x15e   :  { %v1871_v24 = vmul.f32 %v1867_v37, %v1771_v17 }
 0x160   :  { %3634 = vtanh.f32 %v1871_v24 }
 0x163   :  { %v1796_v25 = vpop.f32.mrf.mxu2  ;;  %v1772_v27 = vpop.f32.mrf.mxu0 }
 0x164   :  { %v1809_v26 = vpop.f32.mrf.mxu3  ;;  %v1785_v21 = vpop.f32.mrf.mxu1  ;;  %v1797_v42 = vadd.f32 %v1796_v25, %v1784_v39 }
 0x166   :  { %v3635_v30 = vpop.eup %3634  ;;  %v1810_v44 = vadd.f32 %v1809_v26, %v1797_v42 }
 0x167   :  { %v1879_v31 = vpack.c.bf16 %v3635_v30, %v3635_v30 }
 0x169   :  { %2175 = vmatmul.bf16.vlgmr.msrb.gmra.mxu2 %v1879_v31 }
 0x16b   :  { %v1798_v33 = vpop.f32.mrf.mxu2 }
 0x16c   :  { %v1811_v35 = vpop.f32.mrf.mxu3 }
 0x17b   :  { %v1822_v45 = vpop.f32.mrf.mxu0 }
 0x17c   :  { %v1835_v29 = vpop.f32.mrf.mxu1  ;;  %v1823_v46 = vadd.f32 %v1822_v45, %v1810_v44 }
 0x17e   :  { %v1836_v47 = vadd.f32 %v1835_v29, %v1823_v46 }
 0x183   :  { %v1848_v48 = vpop.f32.mrf.mxu2  ;;  %v1824_v51 = vpop.f32.mrf.mxu0 }
 0x184   :  { %v1849_v49 = vadd.f32 %v1848_v48, %v1836_v47  ;;  %v1861_v50 = vpop.f32.mrf.mxu3  ;;  %v1837_v53 = vpop.f32.mrf.mxu1 }
 0x186   :  { %v1862_v54 = vadd.f32 %v1861_v50, %v1849_v49 }
 0x188   :  { %v1872_v55 = vmul.f32 %v1868_v52, %v1862_v54 }
 0x18a   :  { %3636 = vtanh.f32 %v1872_v55 }
 0x18b   :  { %v1850_v56 = vpop.f32.mrf.mxu2 }
 0x18c   :  { %v1863_v57 = vpop.f32.mrf.mxu3 }
 0x190   :  { %v3637_v61 = vpop.eup %3636 }
 0x191   :  { %v1880_v34 = vpack.c.bf16 %v3637_v61, %v3637_v61 }
 0x193   :  { %2188 = vmatmul.bf16.vlgmr.msrb.gmra.mxu3 %v1880_v34 }
 0x19b   :  { %v2150_v22 = vpop.f32.mrf.mxu0 }
 0x19c   :  { %v2151_v18 = vadd.f32 %v3628_v60, %v2150_v22 }
 0x1a3   :  { %v2152_v59 = vpop.f32.mrf.mxu0 }
 0x1a8   :  { %v2163_v0 = vpop.f32.mrf.mxu1 }
 0x1a9   :  { %v2164_v1 = vadd.f32 %v2163_v0, %v2151_v18 }
 0x1b0   :  { %v2165_v2 = vpop.f32.mrf.mxu1 }
 0x1ec   :  { %v2176_v43 = vpop.f32.mrf.mxu2 }
 0x1ed   :  { %v2177_v11 = vadd.f32 %v2176_v43, %v2164_v1 }
 0x1f4   :  { %v2178_v9 = vpop.f32.mrf.mxu2 }
 0x216   :  { %v2189_v12 = vpop.f32.mrf.mxu3 }
 0x217   :  { %v2190_v63 = vadd.f32 %v2189_v12, %v2177_v11 }
 0x219   :  { %3638 = vtanh.f32 %v2190_v63 }
 0x21e   :  { %v2191_v13 = vpop.f32.mrf.mxu3 }
 0x21f   :  { %v3639_v14 = vpop.eup %3638 }
 0x220   :  { %v2194_v20 = vpack.c.bf16 %v3639_v14, %v3639_v14 }
 0x222   :  { %2271 = vmatmul.bf16.vlgmr.msra.gmra.mxu0 %v2194_v20 }
 0x29f   :  { %v2272_v40 = vpop.f32.mrf.mxu0 }
 0x2a0   :  { %v2273_v41 = vadd.f32 %v3629_v15, %v2272_v40 }
 0x2a2   :  { %2276 = vst [vmem:[#allocation13] sm:$0xff] %v2273_v41 }
 0x2a3   :  { %2287 = dma.vmem_to_hbm [thread:$0]  %s2283_s15, 128, %s2285_s1, [#allocation4]  }
 0x2a7   :  { %v2274_v16 = vpop.f32.mrf.mxu0 }
 0x2a8   :  { %3816 = dma.done.wait [#allocation4], 128  }
 0x2a9   :  { %3817 = vsyncadd [#allocation4], 4294967168 }
 0x2aa   :  { %2292 = vsyncpa [#allocation3], 1 }
 0x2ab   :  { %2293 = vsyncpa [#allocation6], 1 }
 0x2ac   :  { %2294 = vsyncpa [#allocation9], 1 }
 0x2ad   :  { %2295 = vsyncpa [#allocation12], 1 }
 0x2ae   :  { %2296 = vsyncpa [#allocation4], 1 }

</bundles_post_ra>
